<compile_context>
chip_gen: v5e
topology: v5e:2x2
jax: 0.10.0
libtpu: 0.0.40
codegen_flags: <defaults>
</compile_context>

<pallas_src>
import functools

import jax
import jax.numpy as jnp
import numpy as np
from jax.experimental import pallas as pl
from jax.experimental.pallas import tpu as pltpu


def _round_up(x, m):
    return (x + m - 1) // m * m


def _full_spec(shape):
    n = len(shape)
    return pl.BlockSpec(shape, lambda i: (0,) * n)


# ----------------------------------------------------------------------------
# Fused bidirectional LSTM layer kernel (optionally with fused FC epilogue).
# ----------------------------------------------------------------------------
def _lstm_cell(gates, c, hid):
    """gates: (B, 4H) f32 in PyTorch order [i, f, g, o]; c: (B, H) f32."""
    sig = jax.nn.sigmoid(gates)     # full-vreg EUP ops, slice afterwards
    tah = jnp.tanh(gates)
    i = sig[:, 0 * hid:1 * hid]
    f = sig[:, 1 * hid:2 * hid]
    g = tah[:, 2 * hid:3 * hid]
    o = sig[:, 3 * hid:4 * hid]
    c_new = f * c + i * g
    h_new = o * jnp.tanh(c_new)
    return h_new, c_new


def _bilstm_core(x_ref, w_in_ref, b_in_ref, w_hh_ref, pre_scr, hf_scr, hr_scr,
                 *, seq_len, batch):
    """Prologue projection + bidirectional recurrence; fills hf_scr / hr_scr."""
    g8 = w_in_ref.shape[1]          # 8H  (4 gates x 2 directions)
    g4 = g8 // 2                    # 4H
    hid = g4 // 4                   # H

    # ---- Prologue: hoisted input projection (one big MXU matmul, bf16 x bf16,
    #      f32 accumulation), bias folded in. ---------------------------------
    pre = jnp.dot(x_ref[...], w_in_ref[...], preferred_element_type=jnp.float32)
    pre_scr[...] = pre + b_in_ref[...]

    # ---- Recurrence: entire time loop inside the kernel (T is small here so
    #      it is statically unrolled; for large T this would be time-chunked
    #      over a grid axis). --------------------------------------------------
    zeros = jnp.zeros((batch, hid), jnp.float32)
    h_f, c_f, h_r, c_r = zeros, zeros, zeros, zeros
    for t in range(seq_len):
        tr = seq_len - 1 - t
        # One block-diagonal matmul covers both directions' h @ W_hh.
        h_cat = jnp.concatenate([h_f, h_r], axis=-1).astype(w_hh_ref.dtype)
        rec = jnp.dot(h_cat, w_hh_ref[...], preferred_element_type=jnp.float32)
        pre_t = pre_scr[t * batch:(t + 1) * batch, :]
        pre_r = pre_scr[tr * batch:(tr + 1) * batch, :]
        h_f, c_f = _lstm_cell(pre_t[:, :g4] + rec[:, :g4], c_f, hid)
        h_r, c_r = _lstm_cell(pre_r[:, g4:] + rec[:, g4:], c_r, hid)
        hf_scr[t * batch:(t + 1) * batch, :] = h_f
        hr_scr[tr * batch:(tr + 1) * batch, :] = h_r


def _bilstm_layer_kernel(x_ref, w_in_ref, b_in_ref, w_hh_ref, out_ref,
                         pre_scr, hf_scr, hr_scr, *, seq_len, batch):
    _bilstm_core(x_ref, w_in_ref, b_in_ref, w_hh_ref, pre_scr, hf_scr, hr_scr,
                 seq_len=seq_len, batch=batch)
    out_ref[...] = jnp.concatenate(
        [hf_scr[...], hr_scr[...]], axis=-1).astype(out_ref.dtype)


def _bilstm_fc_layer_kernel(x_ref, w_in_ref, b_in_ref, w_hh_ref, fc_w_ref, fc_b_ref,
                            out_ref, pre_scr, hf_scr, hr_scr, *, seq_len, batch):
    _bilstm_core(x_ref, w_in_ref, b_in_ref, w_hh_ref, pre_scr, hf_scr, hr_scr,
                 seq_len=seq_len, batch=batch)
    # Fused FC epilogue: lane-dense (zero-padded to 128) logits output.
    feats = jnp.concatenate([hf_scr[...], hr_scr[...]],
                            axis=-1).astype(fc_w_ref.dtype)
    out_ref[...] = (jnp.dot(feats, fc_w_ref[...],
                            preferred_element_type=jnp.float32) + fc_b_ref[...])


def bilstm_layer(x2d, w_in, b_in, w_hh, *, seq_len, batch, hid,
                 fc_w=None, fc_b=None):
    """x2d: (T*B, D_in) bf16, time-major rows.  Returns (T*B, 2H) bf16 or,
    with fc_w/fc_b, the padded logits (T*B, O_pad) f32."""
    tb = x2d.shape[0]
    g8 = w_in.shape[1]
    scratch = [
        pltpu.VMEM((tb, g8), jnp.float32),    # precomputed gate pre-activations
        pltpu.VMEM((tb, hid), jnp.float32),   # forward-direction h, time-major
        pltpu.VMEM((tb, hid), jnp.float32),   # reverse-direction h, time-major
    ]
    if fc_w is None:
        kernel = functools.partial(_bilstm_layer_kernel,
                                   seq_len=seq_len, batch=batch)
        operands = (x2d, w_in, b_in, w_hh)
        out_shape = jax.ShapeDtypeStruct((tb, 2 * hid), jnp.bfloat16)
    else:
        kernel = functools.partial(_bilstm_fc_layer_kernel,
                                   seq_len=seq_len, batch=batch)
        operands = (x2d, w_in, b_in, w_hh, fc_w, fc_b)
        out_shape = jax.ShapeDtypeStruct((tb, fc_w.shape[1]), jnp.float32)

    return pl.pallas_call(
        kernel,
        out_shape=out_shape,
        grid_spec=pltpu.PrefetchScalarGridSpec(
            num_scalar_prefetch=0,
            grid=(1,),
            in_specs=[_full_spec(op.shape) for op in operands],
            out_specs=_full_spec(out_shape.shape),
            scratch_shapes=scratch),
        compiler_params=pltpu.CompilerParams(
            dimension_semantics=("arbitrary",)),
    )(*operands)


# ----------------------------------------------------------------------------
# Model wrapper: parameter setup + glue in plain JAX, hot path in Pallas.
# ----------------------------------------------------------------------------
class BilstmCrfPallas:
    def __init__(self, key, vocab_size, embedding_dim, hid_dim, n_layers, n_labels):
        self.E, self.H, self.L, self.O = embedding_dim, hid_dim, n_layers, n_labels
        self.Opad = _round_up(max(n_labels, 128), 128)
        keys = iter(jax.random.split(key, 3 + 8 * n_layers))

        def u(k, shape, scale):
            return jax.random.uniform(k, shape, jnp.float32, -scale, scale)

        # nn.Embedding(word_size, embedding_dim): N(0, 1) init in PyTorch.
        self.embedding = jax.random.normal(
            next(keys), (vocab_size, embedding_dim), jnp.float32)

        # nn.LSTM weights, stored pre-transposed for x @ W layout (f32 masters).
        s = 1.0 / np.sqrt(hid_dim)
        self.lstm_params = {}
        for layer in range(n_layers):
            d_in = embedding_dim if layer == 0 else 2 * hid_dim
            for direction in range(2):  # 0 = forward, 1 = reverse
                w_ih = u(next(keys), (d_in, 4 * hid_dim), s)
                w_hh = u(next(keys), (hid_dim, 4 * hid_dim), s)
                b_ih = u(next(keys), (4 * hid_dim,), s)
                b_hh = u(next(keys), (4 * hid_dim,), s)
                self.lstm_params[(layer, direction)] = (w_ih, w_hh, b_ih + b_hh)

        # nn.Linear(hidden_size * 2, output_size)
        sf = 1.0 / np.sqrt(2 * hid_dim)
        self.fc_w = u(next(keys), (2 * hid_dim, n_labels), sf)
        self.fc_b = u(next(keys), (n_labels,), sf)
        # TODO(synk): CRF head is only used in compute_loss/decode, not forward.

        # ---- Kernel-layout packed parameters (bf16 MXU operands). -----------
        H = hid_dim
        self.packed = []
        for layer in range(n_layers):
            wf, whf, bf = self.lstm_params[(layer, 0)]
            wr, whr, br = self.lstm_params[(layer, 1)]
            w_in = jnp.concatenate([wf, wr], axis=1).astype(jnp.bfloat16)  # (Din, 8H)
            b_in = jnp.concatenate([bf, br]).reshape(1, 8 * H)             # f32
            w_blk = jnp.zeros((2 * H, 8 * H), jnp.float32)                 # block-diag
            w_blk = w_blk.at[:H, :4 * H].set(whf)
            w_blk = w_blk.at[H:, 4 * H:].set(whr)
            self.packed.append((w_in, b_in, w_blk.astype(jnp.bfloat16)))

        fc_w_pad = jnp.zeros((2 * H, self.Opad), jnp.float32)
        fc_w_pad = fc_w_pad.at[:, :n_labels].set(self.fc_w)
        self.fc_w_pad = fc_w_pad.astype(jnp.bfloat16)
        self.fc_b_pad = jnp.zeros((1, self.Opad), jnp.float32).at[0, :n_labels].set(self.fc_b)

    def forward(self, tokens):
        """tokens: (B, T) int32  ->  logits (B, T, n_labels) f32."""
        b_real, t_len = tokens.shape
        b_pad = _round_up(max(b_real, 8), 8)      # fill the 8 sublanes / MXU rows

        # Embedding lookup: gather kept in plain JAX glue.
        emb = jnp.take(self.embedding, tokens, axis=0)            # (B, T, E)
        x = jnp.transpose(emb, (1, 0, 2))                          # (T, B, E) time-major
        x = jnp.pad(x, ((0, 0), (0, b_pad - b_real), (0, 0)))
        x2d = x.reshape(t_len * b_pad, self.E).astype(jnp.bfloat16)

        # TODO(synk): inter-layer dropout runs only in train mode; inference here.
        for layer in range(self.L - 1):
            w_in, b_in, w_hh = self.packed[layer]
            x2d = bilstm_layer(x2d, w_in, b_in, w_hh,
                               seq_len=t_len, batch=b_pad, hid=self.H)

        w_in, b_in, w_hh = self.packed[self.L - 1]
        logits2d = bilstm_layer(x2d, w_in, b_in, w_hh,
                                seq_len=t_len, batch=b_pad, hid=self.H,
                                fc_w=self.fc_w_pad, fc_b=self.fc_b_pad)
        logits = logits2d.reshape(t_len, b_pad, self.Opad)[:, :b_real, :self.O]
        return jnp.transpose(logits, (1, 0, 2))                    # (B, T, O)


# ----------------------------------------------------------------------------
# Pure-JAX reference (lax.scan) mirroring the kernel's bf16-matmul precision.
# ----------------------------------------------------------------------------
def forward_ref(model, tokens):
    b, t_len = tokens.shape
    H = model.H
    emb = jnp.take(model.embedding, tokens, axis=0)
    x = jnp.transpose(emb, (1, 0, 2)).astype(jnp.bfloat16)         # (T, B, E)

    for layer in range(model.L):
        outs = []
        for direction in range(2):
            w_ih, w_hh, bias = model.lstm_params[(layer, direction)]
            w_ih_b = w_ih.astype(jnp.bfloat16)
            w_hh_b = w_hh.astype(jnp.bfloat16)
            xs = x[::-1] if direction == 1 else x

            def step(carry, x_t, w_ih_b=w_ih_b, w_hh_b=w_hh_b, bias=bias):
                h, c = carry
                gates = (jnp.dot(x_t, w_ih_b, preferred_element_type=jnp.float32)
                         + jnp.dot(h.astype(jnp.bfloat16), w_hh_b,
                                   preferred_element_type=jnp.float32) + bias)
                i = jax.nn.sigmoid(gates[:, :H])
                f = jax.nn.sigmoid(gates[:, H:2 * H])
                g = jnp.tanh(gates[:, 2 * H:3 * H])
                o = jax.nn.sigmoid(gates[:, 3 * H:])
                c = f * c + i * g
                h = o * jnp.tanh(c)
                return (h, c), h

            init = (jnp.zeros((b, H), jnp.float32), jnp.zeros((b, H), jnp.float32))
            _, hs = jax.lax.scan(step, init, xs)
            if direction == 1:
                hs = hs[::-1]
            outs.append(hs)
        x = jnp.concatenate(outs, axis=-1).astype(jnp.bfloat16)    # (T, B, 2H)

    feats = jnp.transpose(x, (1, 0, 2)).reshape(b * t_len, 2 * H)
    logits = (jnp.dot(feats, model.fc_w.astype(jnp.bfloat16),
                      preferred_element_type=jnp.float32) + model.fc_b)
    return logits.reshape(b, t_len, model.O)


if __name__ == "__main__":
    # Small synthetic config: vocab=50, embedding_dim=32, hid_dim=32,
    # n_layers=2, labels=6, batch=2, seq=8.
    VOCAB, EMB, HID, LAYERS, LABELS = 50, 32, 32, 2, 6
    B, T = 2, 8

    key = jax.random.PRNGKey(0)
    k_model, k_tok = jax.random.split(key)
    model = BilstmCrfPallas(k_model, VOCAB, EMB, HID, LAYERS, LABELS)

    tokens = jax.random.randint(k_tok, (B, T), 0, VOCAB, dtype=jnp.int32)

    logits = jax.block_until_ready(model.forward(tokens))
    assert logits.shape == (B, T, LABELS)
    assert logits.dtype == jnp.float32

    ref = jax.block_until_ready(forward_ref(model, tokens))
    max_diff = np.max(np.abs(np.asarray(logits) - np.asarray(ref)))
    if not np.allclose(np.asarray(logits), np.asarray(ref), rtol=1e-2, atol=1e-2):
        raise AssertionError(
            f"Pallas kernel output mismatch, max abs diff = {max_diff}")

    print("KERNEL_OK")
</pallas_src>

<mosaic_0001>
module attributes {stable_mosaic.version = 11 : i64} {
  func.func @_bilstm_layer_kernel(%arg0: i32, %arg1: memref<64x32xbf16, #tpu.memory_space<vmem>>, %arg2: memref<32x256xbf16, #tpu.memory_space<vmem>>, %arg3: memref<1x256xf32, #tpu.memory_space<vmem>>, %arg4: memref<64x256xbf16, #tpu.memory_space<vmem>>, %arg5: memref<64x64xbf16, #tpu.memory_space<vmem>>, %arg6: memref<64x256xf32, #tpu.memory_space<vmem>>, %arg7: memref<64x32xf32, #tpu.memory_space<vmem>>, %arg8: memref<64x32xf32, #tpu.memory_space<vmem>>) attributes {dimension_semantics = [#tpu.dimension_semantics<arbitrary>], iteration_bounds = array<i64: 1>, scalar_prefetch = 0 : i64, scratch_operands = 3 : i64, tpu.core_type = #tpu.core_type<tc>, window_params = [{pipeline_mode = #tpu.pipeline_mode<synchronous>, transform_indices = @transform_0, window_bounds = array<i64: 64, 32>}, {pipeline_mode = #tpu.pipeline_mode<synchronous>, transform_indices = @transform_1, window_bounds = array<i64: 32, 256>}, {pipeline_mode = #tpu.pipeline_mode<synchronous>, transform_indices = @transform_2, window_bounds = array<i64: 1, 256>}, {pipeline_mode = #tpu.pipeline_mode<synchronous>, transform_indices = @transform_3, window_bounds = array<i64: 64, 256>}, {pipeline_mode = #tpu.pipeline_mode<synchronous>, transform_indices = @transform_4, window_bounds = array<i64: 64, 64>}]} {
    %c0 = arith.constant 0 : index
    %c0_0 = arith.constant 0 : index
    %0 = vector.load %arg1[%c0, %c0_0] : memref<64x32xbf16, #tpu.memory_space<vmem>>, vector<64x32xbf16>
    %c0_1 = arith.constant 0 : index
    %c0_2 = arith.constant 0 : index
    %1 = vector.load %arg2[%c0_1, %c0_2] : memref<32x256xbf16, #tpu.memory_space<vmem>>, vector<32x256xbf16>
    %cst = arith.constant dense<0.000000e+00> : vector<64x256xf32>
    %2 = tpu.matmul %0, %1, %cst {dimension_numbers = #tpu.dot_dimension_numbers<[1], [0], [0], [1], [0, 0, 1, 1], [], []>} : vector<64x32xbf16>, vector<32x256xbf16>, vector<64x256xf32> -> vector<64x256xf32>
    %c0_3 = arith.constant 0 : index
    %c0_4 = arith.constant 0 : index
    %3 = vector.load %arg3[%c0_3, %c0_4] : memref<1x256xf32, #tpu.memory_space<vmem>>, vector<1x256xf32>
    %4 = vector.broadcast %3 : vector<1x256xf32> to vector<64x256xf32>
    %5 = arith.addf %2, %4 : vector<64x256xf32>
    %c0_5 = arith.constant 0 : index
    %c0_6 = arith.constant 0 : index
    %6 = vector.load %arg6[%c0_5, %c0_6] : memref<64x256xf32, #tpu.memory_space<vmem>>, vector<64x256xf32>
    tpu.vector_store %arg6[%c0_5, %c0_6], %5 {strides = array<i32>} : memref<64x256xf32, #tpu.memory_space<vmem>>, vector<64x256xf32>,
    %cst_7 = arith.constant 0.000000e+00 : f32
    %7 = vector.broadcast %cst_7 : f32 to vector<8x32xf32>
    %8 = tpu.concatenate %7, %7 in 1 : vector<8x32xf32>, vector<8x32xf32> -> vector<8x64xf32>
    %9 = arith.truncf %8 : vector<8x64xf32> to vector<8x64xbf16>
    %c0_8 = arith.constant 0 : index
    %c0_9 = arith.constant 0 : index
    %10 = vector.load %arg4[%c0_8, %c0_9] : memref<64x256xbf16, #tpu.memory_space<vmem>>, vector<64x256xbf16>
    %cst_10 = arith.constant dense<0.000000e+00> : vector<8x256xf32>
    %11 = tpu.matmul %9, %10, %cst_10 {dimension_numbers = #tpu.dot_dimension_numbers<[1], [0], [0], [1], [0, 0, 1, 1], [], []>} : vector<8x64xbf16>, vector<64x256xbf16>, vector<8x256xf32> -> vector<8x256xf32>
    %c0_11 = arith.constant 0 : index
    %c0_12 = arith.constant 0 : index
    %12 = vector.load %arg6[%c0_11, %c0_12] : memref<64x256xf32, #tpu.memory_space<vmem>>, vector<8x256xf32>
    %c56 = arith.constant 56 : index
    %c0_13 = arith.constant 0 : index
    %13 = vector.load %arg6[%c56, %c0_13] : memref<64x256xf32, #tpu.memory_space<vmem>>, vector<8x256xf32>
    %14 = vector.extract_strided_slice %12 {offsets = [0, 0], sizes = [8, 128], strides = [1, 1]} : vector<8x256xf32> to vector<8x128xf32>
    %15 = vector.extract_strided_slice %11 {offsets = [0, 0], sizes = [8, 128], strides = [1, 1]} : vector<8x256xf32> to vector<8x128xf32>
    %16 = arith.addf %14, %15 : vector<8x128xf32>
    %17 = arith.negf %16 : vector<8x128xf32>
    %18 = math.exp %17 : vector<8x128xf32>
    %cst_14 = arith.constant 1.000000e+00 : f32
    %19 = vector.broadcast %cst_14 : f32 to vector<8x128xf32>
    %20 = arith.addf %19, %18 : vector<8x128xf32>
    %21 = arith.divf %19, %20 : vector<8x128xf32>
    %22 = math.tanh %16 : vector<8x128xf32>
    %23 = vector.extract_strided_slice %21 {offsets = [0, 0], sizes = [8, 32], strides = [1, 1]} : vector<8x128xf32> to vector<8x32xf32>
    %24 = vector.extract_strided_slice %21 {offsets = [0, 32], sizes = [8, 32], strides = [1, 1]} : vector<8x128xf32> to vector<8x32xf32>
    %25 = vector.extract_strided_slice %22 {offsets = [0, 64], sizes = [8, 32], strides = [1, 1]} : vector<8x128xf32> to vector<8x32xf32>
    %26 = vector.extract_strided_slice %21 {offsets = [0, 96], sizes = [8, 32], strides = [1, 1]} : vector<8x128xf32> to vector<8x32xf32>
    %27 = arith.mulf %24, %7 : vector<8x32xf32>
    %28 = arith.mulf %23, %25 : vector<8x32xf32>
    %29 = arith.addf %27, %28 : vector<8x32xf32>
    %30 = math.tanh %29 : vector<8x32xf32>
    %31 = arith.mulf %26, %30 : vector<8x32xf32>
    %32 = vector.extract_strided_slice %13 {offsets = [0, 128], sizes = [8, 128], strides = [1, 1]} : vector<8x256xf32> to vector<8x128xf32>
    %33 = vector.extract_strided_slice %11 {offsets = [0, 128], sizes = [8, 128], strides = [1, 1]} : vector<8x256xf32> to vector<8x128xf32>
    %34 = arith.addf %32, %33 : vector<8x128xf32>
    %35 = arith.negf %34 : vector<8x128xf32>
    %36 = math.exp %35 : vector<8x128xf32>
    %cst_15 = arith.constant 1.000000e+00 : f32
    %37 = vector.broadcast %cst_15 : f32 to vector<8x128xf32>
    %38 = arith.addf %37, %36 : vector<8x128xf32>
    %39 = arith.divf %37, %38 : vector<8x128xf32>
    %40 = math.tanh %34 : vector<8x128xf32>
    %41 = vector.extract_strided_slice %39 {offsets = [0, 0], sizes = [8, 32], strides = [1, 1]} : vector<8x128xf32> to vector<8x32xf32>
    %42 = vector.extract_strided_slice %39 {offsets = [0, 32], sizes = [8, 32], strides = [1, 1]} : vector<8x128xf32> to vector<8x32xf32>
    %43 = vector.extract_strided_slice %40 {offsets = [0, 64], sizes = [8, 32], strides = [1, 1]} : vector<8x128xf32> to vector<8x32xf32>
    %44 = vector.extract_strided_slice %39 {offsets = [0, 96], sizes = [8, 32], strides = [1, 1]} : vector<8x128xf32> to vector<8x32xf32>
    %45 = arith.mulf %42, %7 : vector<8x32xf32>
    %46 = arith.mulf %41, %43 : vector<8x32xf32>
    %47 = arith.addf %45, %46 : vector<8x32xf32>
    %48 = math.tanh %47 : vector<8x32xf32>
    %49 = arith.mulf %44, %48 : vector<8x32xf32>
    %c0_16 = arith.constant 0 : index
    %c0_17 = arith.constant 0 : index
    %50 = vector.load %arg7[%c0_16, %c0_17] : memref<64x32xf32, #tpu.memory_space<vmem>>, vector<8x32xf32>
    tpu.vector_store %arg7[%c0_16, %c0_17], %31 {strides = array<i32>} : memref<64x32xf32, #tpu.memory_space<vmem>>, vector<8x32xf32>,
    %c56_18 = arith.constant 56 : index
    %c0_19 = arith.constant 0 : index
    %51 = vector.load %arg8[%c56_18, %c0_19] : memref<64x32xf32, #tpu.memory_space<vmem>>, vector<8x32xf32>
    tpu.vector_store %arg8[%c56_18, %c0_19], %49 {strides = array<i32>} : memref<64x32xf32, #tpu.memory_space<vmem>>, vector<8x32xf32>,
    %52 = tpu.concatenate %31, %49 in 1 : vector<8x32xf32>, vector<8x32xf32> -> vector<8x64xf32>
    %53 = arith.truncf %52 : vector<8x64xf32> to vector<8x64xbf16>
    %c0_20 = arith.constant 0 : index
    %c0_21 = arith.constant 0 : index
    %54 = vector.load %arg4[%c0_20, %c0_21] : memref<64x256xbf16, #tpu.memory_space<vmem>>, vector<64x256xbf16>
    %cst_22 = arith.constant dense<0.000000e+00> : vector<8x256xf32>
    %55 = tpu.matmul %53, %54, %cst_22 {dimension_numbers = #tpu.dot_dimension_numbers<[1], [0], [0], [1], [0, 0, 1, 1], [], []>} : vector<8x64xbf16>, vector<64x256xbf16>, vector<8x256xf32> -> vector<8x256xf32>
    %c8 = arith.constant 8 : index
    %c0_23 = arith.constant 0 : index
    %56 = vector.load %arg6[%c8, %c0_23] : memref<64x256xf32, #tpu.memory_space<vmem>>, vector<8x256xf32>
    %c48 = arith.constant 48 : index
    %c0_24 = arith.constant 0 : index
    %57 = vector.load %arg6[%c48, %c0_24] : memref<64x256xf32, #tpu.memory_space<vmem>>, vector<8x256xf32>
    %58 = vector.extract_strided_slice %56 {offsets = [0, 0], sizes = [8, 128], strides = [1, 1]} : vector<8x256xf32> to vector<8x128xf32>
    %59 = vector.extract_strided_slice %55 {offsets = [0, 0], sizes = [8, 128], strides = [1, 1]} : vector<8x256xf32> to vector<8x128xf32>
    %60 = arith.addf %58, %59 : vector<8x128xf32>
    %61 = arith.negf %60 : vector<8x128xf32>
    %62 = math.exp %61 : vector<8x128xf32>
    %cst_25 = arith.constant 1.000000e+00 : f32
    %63 = vector.broadcast %cst_25 : f32 to vector<8x128xf32>
    %64 = arith.addf %63, %62 : vector<8x128xf32>
    %65 = arith.divf %63, %64 : vector<8x128xf32>
    %66 = math.tanh %60 : vector<8x128xf32>
    %67 = vector.extract_strided_slice %65 {offsets = [0, 0], sizes = [8, 32], strides = [1, 1]} : vector<8x128xf32> to vector<8x32xf32>
    %68 = vector.extract_strided_slice %65 {offsets = [0, 32], sizes = [8, 32], strides = [1, 1]} : vector<8x128xf32> to vector<8x32xf32>
    %69 = vector.extract_strided_slice %66 {offsets = [0, 64], sizes = [8, 32], strides = [1, 1]} : vector<8x128xf32> to vector<8x32xf32>
    %70 = vector.extract_strided_slice %65 {offsets = [0, 96], sizes = [8, 32], strides = [1, 1]} : vector<8x128xf32> to vector<8x32xf32>
    %71 = arith.mulf %68, %29 : vector<8x32xf32>
    %72 = arith.mulf %67, %69 : vector<8x32xf32>
    %73 = arith.addf %71, %72 : vector<8x32xf32>
    %74 = math.tanh %73 : vector<8x32xf32>
    %75 = arith.mulf %70, %74 : vector<8x32xf32>
    %76 = vector.extract_strided_slice %57 {offsets = [0, 128], sizes = [8, 128], strides = [1, 1]} : vector<8x256xf32> to vector<8x128xf32>
    %77 = vector.extract_strided_slice %55 {offsets = [0, 128], sizes = [8, 128], strides = [1, 1]} : vector<8x256xf32> to vector<8x128xf32>
    %78 = arith.addf %76, %77 : vector<8x128xf32>
    %79 = arith.negf %78 : vector<8x128xf32>
    %80 = math.exp %79 : vector<8x128xf32>
    %cst_26 = arith.constant 1.000000e+00 : f32
    %81 = vector.broadcast %cst_26 : f32 to vector<8x128xf32>
    %82 = arith.addf %81, %80 : vector<8x128xf32>
    %83 = arith.divf %81, %82 : vector<8x128xf32>
    %84 = math.tanh %78 : vector<8x128xf32>
    %85 = vector.extract_strided_slice %83 {offsets = [0, 0], sizes = [8, 32], strides = [1, 1]} : vector<8x128xf32> to vector<8x32xf32>
    %86 = vector.extract_strided_slice %83 {offsets = [0, 32], sizes = [8, 32], strides = [1, 1]} : vector<8x128xf32> to vector<8x32xf32>
    %87 = vector.extract_strided_slice %84 {offsets = [0, 64], sizes = [8, 32], strides = [1, 1]} : vector<8x128xf32> to vector<8x32xf32>
    %88 = vector.extract_strided_slice %83 {offsets = [0, 96], sizes = [8, 32], strides = [1, 1]} : vector<8x128xf32> to vector<8x32xf32>
    %89 = arith.mulf %86, %47 : vector<8x32xf32>
    %90 = arith.mulf %85, %87 : vector<8x32xf32>
    %91 = arith.addf %89, %90 : vector<8x32xf32>
    %92 = math.tanh %91 : vector<8x32xf32>
    %93 = arith.mulf %88, %92 : vector<8x32xf32>
    %c8_27 = arith.constant 8 : index
    %c0_28 = arith.constant 0 : index
    %94 = vector.load %arg7[%c8_27, %c0_28] : memref<64x32xf32, #tpu.memory_space<vmem>>, vector<8x32xf32>
    tpu.vector_store %arg7[%c8_27, %c0_28], %75 {strides = array<i32>} : memref<64x32xf32, #tpu.memory_space<vmem>>, vector<8x32xf32>,
    %c48_29 = arith.constant 48 : index
    %c0_30 = arith.constant 0 : index
    %95 = vector.load %arg8[%c48_29, %c0_30] : memref<64x32xf32, #tpu.memory_space<vmem>>, vector<8x32xf32>
    tpu.vector_store %arg8[%c48_29, %c0_30], %93 {strides = array<i32>} : memref<64x32xf32, #tpu.memory_space<vmem>>, vector<8x32xf32>,
    %96 = tpu.concatenate %75, %93 in 1 : vector<8x32xf32>, vector<8x32xf32> -> vector<8x64xf32>
    %97 = arith.truncf %96 : vector<8x64xf32> to vector<8x64xbf16>
    %c0_31 = arith.constant 0 : index
    %c0_32 = arith.constant 0 : index
    %98 = vector.load %arg4[%c0_31, %c0_32] : memref<64x256xbf16, #tpu.memory_space<vmem>>, vector<64x256xbf16>
    %cst_33 = arith.constant dense<0.000000e+00> : vector<8x256xf32>
    %99 = tpu.matmul %97, %98, %cst_33 {dimension_numbers = #tpu.dot_dimension_numbers<[1], [0], [0], [1], [0, 0, 1, 1], [], []>} : vector<8x64xbf16>, vector<64x256xbf16>, vector<8x256xf32> -> vector<8x256xf32>
    %c16 = arith.constant 16 : index
    %c0_34 = arith.constant 0 : index
    %100 = vector.load %arg6[%c16, %c0_34] : memref<64x256xf32, #tpu.memory_space<vmem>>, vector<8x256xf32>
    %c40 = arith.constant 40 : index
    %c0_35 = arith.constant 0 : index
    %101 = vector.load %arg6[%c40, %c0_35] : memref<64x256xf32, #tpu.memory_space<vmem>>, vector<8x256xf32>
    %102 = vector.extract_strided_slice %100 {offsets = [0, 0], sizes = [8, 128], strides = [1, 1]} : vector<8x256xf32> to vector<8x128xf32>
    %103 = vector.extract_strided_slice %99 {offsets = [0, 0], sizes = [8, 128], strides = [1, 1]} : vector<8x256xf32> to vector<8x128xf32>
    %104 = arith.addf %102, %103 : vector<8x128xf32>
    %105 = arith.negf %104 : vector<8x128xf32>
    %106 = math.exp %105 : vector<8x128xf32>
    %cst_36 = arith.constant 1.000000e+00 : f32
    %107 = vector.broadcast %cst_36 : f32 to vector<8x128xf32>
    %108 = arith.addf %107, %106 : vector<8x128xf32>
    %109 = arith.divf %107, %108 : vector<8x128xf32>
    %110 = math.tanh %104 : vector<8x128xf32>
    %111 = vector.extract_strided_slice %109 {offsets = [0, 0], sizes = [8, 32], strides = [1, 1]} : vector<8x128xf32> to vector<8x32xf32>
    %112 = vector.extract_strided_slice %109 {offsets = [0, 32], sizes = [8, 32], strides = [1, 1]} : vector<8x128xf32> to vector<8x32xf32>
    %113 = vector.extract_strided_slice %110 {offsets = [0, 64], sizes = [8, 32], strides = [1, 1]} : vector<8x128xf32> to vector<8x32xf32>
    %114 = vector.extract_strided_slice %109 {offsets = [0, 96], sizes = [8, 32], strides = [1, 1]} : vector<8x128xf32> to vector<8x32xf32>
    %115 = arith.mulf %112, %73 : vector<8x32xf32>
    %116 = arith.mulf %111, %113 : vector<8x32xf32>
    %117 = arith.addf %115, %116 : vector<8x32xf32>
    %118 = math.tanh %117 : vector<8x32xf32>
    %119 = arith.mulf %114, %118 : vector<8x32xf32>
    %120 = vector.extract_strided_slice %101 {offsets = [0, 128], sizes = [8, 128], strides = [1, 1]} : vector<8x256xf32> to vector<8x128xf32>
    %121 = vector.extract_strided_slice %99 {offsets = [0, 128], sizes = [8, 128], strides = [1, 1]} : vector<8x256xf32> to vector<8x128xf32>
    %122 = arith.addf %120, %121 : vector<8x128xf32>
    %123 = arith.negf %122 : vector<8x128xf32>
    %124 = math.exp %123 : vector<8x128xf32>
    %cst_37 = arith.constant 1.000000e+00 : f32
    %125 = vector.broadcast %cst_37 : f32 to vector<8x128xf32>
    %126 = arith.addf %125, %124 : vector<8x128xf32>
    %127 = arith.divf %125, %126 : vector<8x128xf32>
    %128 = math.tanh %122 : vector<8x128xf32>
    %129 = vector.extract_strided_slice %127 {offsets = [0, 0], sizes = [8, 32], strides = [1, 1]} : vector<8x128xf32> to vector<8x32xf32>
    %130 = vector.extract_strided_slice %127 {offsets = [0, 32], sizes = [8, 32], strides = [1, 1]} : vector<8x128xf32> to vector<8x32xf32>
    %131 = vector.extract_strided_slice %128 {offsets = [0, 64], sizes = [8, 32], strides = [1, 1]} : vector<8x128xf32> to vector<8x32xf32>
    %132 = vector.extract_strided_slice %127 {offsets = [0, 96], sizes = [8, 32], strides = [1, 1]} : vector<8x128xf32> to vector<8x32xf32>
    %133 = arith.mulf %130, %91 : vector<8x32xf32>
    %134 = arith.mulf %129, %131 : vector<8x32xf32>
    %135 = arith.addf %133, %134 : vector<8x32xf32>
    %136 = math.tanh %135 : vector<8x32xf32>
    %137 = arith.mulf %132, %136 : vector<8x32xf32>
    %c16_38 = arith.constant 16 : index
    %c0_39 = arith.constant 0 : index
    %138 = vector.load %arg7[%c16_38, %c0_39] : memref<64x32xf32, #tpu.memory_space<vmem>>, vector<8x32xf32>
    tpu.vector_store %arg7[%c16_38, %c0_39], %119 {strides = array<i32>} : memref<64x32xf32, #tpu.memory_space<vmem>>, vector<8x32xf32>,
    %c40_40 = arith.constant 40 : index
    %c0_41 = arith.constant 0 : index
    %139 = vector.load %arg8[%c40_40, %c0_41] : memref<64x32xf32, #tpu.memory_space<vmem>>, vector<8x32xf32>
    tpu.vector_store %arg8[%c40_40, %c0_41], %137 {strides = array<i32>} : memref<64x32xf32, #tpu.memory_space<vmem>>, vector<8x32xf32>,
    %140 = tpu.concatenate %119, %137 in 1 : vector<8x32xf32>, vector<8x32xf32> -> vector<8x64xf32>
    %141 = arith.truncf %140 : vector<8x64xf32> to vector<8x64xbf16>
    %c0_42 = arith.constant 0 : index
    %c0_43 = arith.constant 0 : index
    %142 = vector.load %arg4[%c0_42, %c0_43] : memref<64x256xbf16, #tpu.memory_space<vmem>>, vector<64x256xbf16>
    %cst_44 = arith.constant dense<0.000000e+00> : vector<8x256xf32>
    %143 = tpu.matmul %141, %142, %cst_44 {dimension_numbers = #tpu.dot_dimension_numbers<[1], [0], [0], [1], [0, 0, 1, 1], [], []>} : vector<8x64xbf16>, vector<64x256xbf16>, vector<8x256xf32> -> vector<8x256xf32>
    %c24 = arith.constant 24 : index
    %c0_45 = arith.constant 0 : index
    %144 = vector.load %arg6[%c24, %c0_45] : memref<64x256xf32, #tpu.memory_space<vmem>>, vector<8x256xf32>
    %c32 = arith.constant 32 : index
    %c0_46 = arith.constant 0 : index
    %145 = vector.load %arg6[%c32, %c0_46] : memref<64x256xf32, #tpu.memory_space<vmem>>, vector<8x256xf32>
    %146 = vector.extract_strided_slice %144 {offsets = [0, 0], sizes = [8, 128], strides = [1, 1]} : vector<8x256xf32> to vector<8x128xf32>
    %147 = vector.extract_strided_slice %143 {offsets = [0, 0], sizes = [8, 128], strides = [1, 1]} : vector<8x256xf32> to vector<8x128xf32>
    %148 = arith.addf %146, %147 : vector<8x128xf32>
    %149 = arith.negf %148 : vector<8x128xf32>
    %150 = math.exp %149 : vector<8x128xf32>
    %cst_47 = arith.constant 1.000000e+00 : f32
    %151 = vector.broadcast %cst_47 : f32 to vector<8x128xf32>
    %152 = arith.addf %151, %150 : vector<8x128xf32>
    %153 = arith.divf %151, %152 : vector<8x128xf32>
    %154 = math.tanh %148 : vector<8x128xf32>
    %155 = vector.extract_strided_slice %153 {offsets = [0, 0], sizes = [8, 32], strides = [1, 1]} : vector<8x128xf32> to vector<8x32xf32>
    %156 = vector.extract_strided_slice %153 {offsets = [0, 32], sizes = [8, 32], strides = [1, 1]} : vector<8x128xf32> to vector<8x32xf32>
    %157 = vector.extract_strided_slice %154 {offsets = [0, 64], sizes = [8, 32], strides = [1, 1]} : vector<8x128xf32> to vector<8x32xf32>
    %158 = vector.extract_strided_slice %153 {offsets = [0, 96], sizes = [8, 32], strides = [1, 1]} : vector<8x128xf32> to vector<8x32xf32>
    %159 = arith.mulf %156, %117 : vector<8x32xf32>
    %160 = arith.mulf %155, %157 : vector<8x32xf32>
    %161 = arith.addf %159, %160 : vector<8x32xf32>
    %162 = math.tanh %161 : vector<8x32xf32>
    %163 = arith.mulf %158, %162 : vector<8x32xf32>
    %164 = vector.extract_strided_slice %145 {offsets = [0, 128], sizes = [8, 128], strides = [1, 1]} : vector<8x256xf32> to vector<8x128xf32>
    %165 = vector.extract_strided_slice %143 {offsets = [0, 128], sizes = [8, 128], strides = [1, 1]} : vector<8x256xf32> to vector<8x128xf32>
    %166 = arith.addf %164, %165 : vector<8x128xf32>
    %167 = arith.negf %166 : vector<8x128xf32>
    %168 = math.exp %167 : vector<8x128xf32>
    %cst_48 = arith.constant 1.000000e+00 : f32
    %169 = vector.broadcast %cst_48 : f32 to vector<8x128xf32>
    %170 = arith.addf %169, %168 : vector<8x128xf32>
    %171 = arith.divf %169, %170 : vector<8x128xf32>
    %172 = math.tanh %166 : vector<8x128xf32>
    %173 = vector.extract_strided_slice %171 {offsets = [0, 0], sizes = [8, 32], strides = [1, 1]} : vector<8x128xf32> to vector<8x32xf32>
    %174 = vector.extract_strided_slice %171 {offsets = [0, 32], sizes = [8, 32], strides = [1, 1]} : vector<8x128xf32> to vector<8x32xf32>
    %175 = vector.extract_strided_slice %172 {offsets = [0, 64], sizes = [8, 32], strides = [1, 1]} : vector<8x128xf32> to vector<8x32xf32>
    %176 = vector.extract_strided_slice %171 {offsets = [0, 96], sizes = [8, 32], strides = [1, 1]} : vector<8x128xf32> to vector<8x32xf32>
    %177 = arith.mulf %174, %135 : vector<8x32xf32>
    %178 = arith.mulf %173, %175 : vector<8x32xf32>
    %179 = arith.addf %177, %178 : vector<8x32xf32>
    %180 = math.tanh %179 : vector<8x32xf32>
    %181 = arith.mulf %176, %180 : vector<8x32xf32>
    %c24_49 = arith.constant 24 : index
    %c0_50 = arith.constant 0 : index
    %182 = vector.load %arg7[%c24_49, %c0_50] : memref<64x32xf32, #tpu.memory_space<vmem>>, vector<8x32xf32>
    tpu.vector_store %arg7[%c24_49, %c0_50], %163 {strides = array<i32>} : memref<64x32xf32, #tpu.memory_space<vmem>>, vector<8x32xf32>,
    %c32_51 = arith.constant 32 : index
    %c0_52 = arith.constant 0 : index
    %183 = vector.load %arg8[%c32_51, %c0_52] : memref<64x32xf32, #tpu.memory_space<vmem>>, vector<8x32xf32>
    tpu.vector_store %arg8[%c32_51, %c0_52], %181 {strides = array<i32>} : memref<64x32xf32, #tpu.memory_space<vmem>>, vector<8x32xf32>,
    %184 = tpu.concatenate %163, %181 in 1 : vector<8x32xf32>, vector<8x32xf32> -> vector<8x64xf32>
    %185 = arith.truncf %184 : vector<8x64xf32> to vector<8x64xbf16>
    %c0_53 = arith.constant 0 : index
    %c0_54 = arith.constant 0 : index
    %186 = vector.load %arg4[%c0_53, %c0_54] : memref<64x256xbf16, #tpu.memory_space<vmem>>, vector<64x256xbf16>
    %cst_55 = arith.constant dense<0.000000e+00> : vector<8x256xf32>
    %187 = tpu.matmul %185, %186, %cst_55 {dimension_numbers = #tpu.dot_dimension_numbers<[1], [0], [0], [1], [0, 0, 1, 1], [], []>} : vector<8x64xbf16>, vector<64x256xbf16>, vector<8x256xf32> -> vector<8x256xf32>
    %c32_56 = arith.constant 32 : index
    %c0_57 = arith.constant 0 : index
    %188 = vector.load %arg6[%c32_56, %c0_57] : memref<64x256xf32, #tpu.memory_space<vmem>>, vector<8x256xf32>
    %c24_58 = arith.constant 24 : index
    %c0_59 = arith.constant 0 : index
    %189 = vector.load %arg6[%c24_58, %c0_59] : memref<64x256xf32, #tpu.memory_space<vmem>>, vector<8x256xf32>
    %190 = vector.extract_strided_slice %188 {offsets = [0, 0], sizes = [8, 128], strides = [1, 1]} : vector<8x256xf32> to vector<8x128xf32>
    %191 = vector.extract_strided_slice %187 {offsets = [0, 0], sizes = [8, 128], strides = [1, 1]} : vector<8x256xf32> to vector<8x128xf32>
    %192 = arith.addf %190, %191 : vector<8x128xf32>
    %193 = arith.negf %192 : vector<8x128xf32>
    %194 = math.exp %193 : vector<8x128xf32>
    %cst_60 = arith.constant 1.000000e+00 : f32
    %195 = vector.broadcast %cst_60 : f32 to vector<8x128xf32>
    %196 = arith.addf %195, %194 : vector<8x128xf32>
    %197 = arith.divf %195, %196 : vector<8x128xf32>
    %198 = math.tanh %192 : vector<8x128xf32>
    %199 = vector.extract_strided_slice %197 {offsets = [0, 0], sizes = [8, 32], strides = [1, 1]} : vector<8x128xf32> to vector<8x32xf32>
    %200 = vector.extract_strided_slice %197 {offsets = [0, 32], sizes = [8, 32], strides = [1, 1]} : vector<8x128xf32> to vector<8x32xf32>
    %201 = vector.extract_strided_slice %198 {offsets = [0, 64], sizes = [8, 32], strides = [1, 1]} : vector<8x128xf32> to vector<8x32xf32>
    %202 = vector.extract_strided_slice %197 {offsets = [0, 96], sizes = [8, 32], strides = [1, 1]} : vector<8x128xf32> to vector<8x32xf32>
    %203 = arith.mulf %200, %161 : vector<8x32xf32>
    %204 = arith.mulf %199, %201 : vector<8x32xf32>
    %205 = arith.addf %203, %204 : vector<8x32xf32>
    %206 = math.tanh %205 : vector<8x32xf32>
    %207 = arith.mulf %202, %206 : vector<8x32xf32>
    %208 = vector.extract_strided_slice %189 {offsets = [0, 128], sizes = [8, 128], strides = [1, 1]} : vector<8x256xf32> to vector<8x128xf32>
    %209 = vector.extract_strided_slice %187 {offsets = [0, 128], sizes = [8, 128], strides = [1, 1]} : vector<8x256xf32> to vector<8x128xf32>
    %210 = arith.addf %208, %209 : vector<8x128xf32>
    %211 = arith.negf %210 : vector<8x128xf32>
    %212 = math.exp %211 : vector<8x128xf32>
    %cst_61 = arith.constant 1.000000e+00 : f32
    %213 = vector.broadcast %cst_61 : f32 to vector<8x128xf32>
    %214 = arith.addf %213, %212 : vector<8x128xf32>
    %215 = arith.divf %213, %214 : vector<8x128xf32>
    %216 = math.tanh %210 : vector<8x128xf32>
    %217 = vector.extract_strided_slice %215 {offsets = [0, 0], sizes = [8, 32], strides = [1, 1]} : vector<8x128xf32> to vector<8x32xf32>
    %218 = vector.extract_strided_slice %215 {offsets = [0, 32], sizes = [8, 32], strides = [1, 1]} : vector<8x128xf32> to vector<8x32xf32>
    %219 = vector.extract_strided_slice %216 {offsets = [0, 64], sizes = [8, 32], strides = [1, 1]} : vector<8x128xf32> to vector<8x32xf32>
    %220 = vector.extract_strided_slice %215 {offsets = [0, 96], sizes = [8, 32], strides = [1, 1]} : vector<8x128xf32> to vector<8x32xf32>
    %221 = arith.mulf %218, %179 : vector<8x32xf32>
    %222 = arith.mulf %217, %219 : vector<8x32xf32>
    %223 = arith.addf %221, %222 : vector<8x32xf32>
    %224 = math.tanh %223 : vector<8x32xf32>
    %225 = arith.mulf %220, %224 : vector<8x32xf32>
    %c32_62 = arith.constant 32 : index
    %c0_63 = arith.constant 0 : index
    %226 = vector.load %arg7[%c32_62, %c0_63] : memref<64x32xf32, #tpu.memory_space<vmem>>, vector<8x32xf32>
    tpu.vector_store %arg7[%c32_62, %c0_63], %207 {strides = array<i32>} : memref<64x32xf32, #tpu.memory_space<vmem>>, vector<8x32xf32>,
    %c24_64 = arith.constant 24 : index
    %c0_65 = arith.constant 0 : index
    %227 = vector.load %arg8[%c24_64, %c0_65] : memref<64x32xf32, #tpu.memory_space<vmem>>, vector<8x32xf32>
    tpu.vector_store %arg8[%c24_64, %c0_65], %225 {strides = array<i32>} : memref<64x32xf32, #tpu.memory_space<vmem>>, vector<8x32xf32>,
    %228 = tpu.concatenate %207, %225 in 1 : vector<8x32xf32>, vector<8x32xf32> -> vector<8x64xf32>
    %229 = arith.truncf %228 : vector<8x64xf32> to vector<8x64xbf16>
    %c0_66 = arith.constant 0 : index
    %c0_67 = arith.constant 0 : index
    %230 = vector.load %arg4[%c0_66, %c0_67] : memref<64x256xbf16, #tpu.memory_space<vmem>>, vector<64x256xbf16>
    %cst_68 = arith.constant dense<0.000000e+00> : vector<8x256xf32>
    %231 = tpu.matmul %229, %230, %cst_68 {dimension_numbers = #tpu.dot_dimension_numbers<[1], [0], [0], [1], [0, 0, 1, 1], [], []>} : vector<8x64xbf16>, vector<64x256xbf16>, vector<8x256xf32> -> vector<8x256xf32>
    %c40_69 = arith.constant 40 : index
    %c0_70 = arith.constant 0 : index
    %232 = vector.load %arg6[%c40_69, %c0_70] : memref<64x256xf32, #tpu.memory_space<vmem>>, vector<8x256xf32>
    %c16_71 = arith.constant 16 : index
    %c0_72 = arith.constant 0 : index
    %233 = vector.load %arg6[%c16_71, %c0_72] : memref<64x256xf32, #tpu.memory_space<vmem>>, vector<8x256xf32>
    %234 = vector.extract_strided_slice %232 {offsets = [0, 0], sizes = [8, 128], strides = [1, 1]} : vector<8x256xf32> to vector<8x128xf32>
    %235 = vector.extract_strided_slice %231 {offsets = [0, 0], sizes = [8, 128], strides = [1, 1]} : vector<8x256xf32> to vector<8x128xf32>
    %236 = arith.addf %234, %235 : vector<8x128xf32>
    %237 = arith.negf %236 : vector<8x128xf32>
    %238 = math.exp %237 : vector<8x128xf32>
    %cst_73 = arith.constant 1.000000e+00 : f32
    %239 = vector.broadcast %cst_73 : f32 to vector<8x128xf32>
    %240 = arith.addf %239, %238 : vector<8x128xf32>
    %241 = arith.divf %239, %240 : vector<8x128xf32>
    %242 = math.tanh %236 : vector<8x128xf32>
    %243 = vector.extract_strided_slice %241 {offsets = [0, 0], sizes = [8, 32], strides = [1, 1]} : vector<8x128xf32> to vector<8x32xf32>
    %244 = vector.extract_strided_slice %241 {offsets = [0, 32], sizes = [8, 32], strides = [1, 1]} : vector<8x128xf32> to vector<8x32xf32>
    %245 = vector.extract_strided_slice %242 {offsets = [0, 64], sizes = [8, 32], strides = [1, 1]} : vector<8x128xf32> to vector<8x32xf32>
    %246 = vector.extract_strided_slice %241 {offsets = [0, 96], sizes = [8, 32], strides = [1, 1]} : vector<8x128xf32> to vector<8x32xf32>
    %247 = arith.mulf %244, %205 : vector<8x32xf32>
    %248 = arith.mulf %243, %245 : vector<8x32xf32>
    %249 = arith.addf %247, %248 : vector<8x32xf32>
    %250 = math.tanh %249 : vector<8x32xf32>
    %251 = arith.mulf %246, %250 : vector<8x32xf32>
    %252 = vector.extract_strided_slice %233 {offsets = [0, 128], sizes = [8, 128], strides = [1, 1]} : vector<8x256xf32> to vector<8x128xf32>
    %253 = vector.extract_strided_slice %231 {offsets = [0, 128], sizes = [8, 128], strides = [1, 1]} : vector<8x256xf32> to vector<8x128xf32>
    %254 = arith.addf %252, %253 : vector<8x128xf32>
    %255 = arith.negf %254 : vector<8x128xf32>
    %256 = math.exp %255 : vector<8x128xf32>
    %cst_74 = arith.constant 1.000000e+00 : f32
    %257 = vector.broadcast %cst_74 : f32 to vector<8x128xf32>
    %258 = arith.addf %257, %256 : vector<8x128xf32>
    %259 = arith.divf %257, %258 : vector<8x128xf32>
    %260 = math.tanh %254 : vector<8x128xf32>
    %261 = vector.extract_strided_slice %259 {offsets = [0, 0], sizes = [8, 32], strides = [1, 1]} : vector<8x128xf32> to vector<8x32xf32>
    %262 = vector.extract_strided_slice %259 {offsets = [0, 32], sizes = [8, 32], strides = [1, 1]} : vector<8x128xf32> to vector<8x32xf32>
    %263 = vector.extract_strided_slice %260 {offsets = [0, 64], sizes = [8, 32], strides = [1, 1]} : vector<8x128xf32> to vector<8x32xf32>
    %264 = vector.extract_strided_slice %259 {offsets = [0, 96], sizes = [8, 32], strides = [1, 1]} : vector<8x128xf32> to vector<8x32xf32>
    %265 = arith.mulf %262, %223 : vector<8x32xf32>
    %266 = arith.mulf %261, %263 : vector<8x32xf32>
    %267 = arith.addf %265, %266 : vector<8x32xf32>
    %268 = math.tanh %267 : vector<8x32xf32>
    %269 = arith.mulf %264, %268 : vector<8x32xf32>
    %c40_75 = arith.constant 40 : index
    %c0_76 = arith.constant 0 : index
    %270 = vector.load %arg7[%c40_75, %c0_76] : memref<64x32xf32, #tpu.memory_space<vmem>>, vector<8x32xf32>
    tpu.vector_store %arg7[%c40_75, %c0_76], %251 {strides = array<i32>} : memref<64x32xf32, #tpu.memory_space<vmem>>, vector<8x32xf32>,
    %c16_77 = arith.constant 16 : index
    %c0_78 = arith.constant 0 : index
    %271 = vector.load %arg8[%c16_77, %c0_78] : memref<64x32xf32, #tpu.memory_space<vmem>>, vector<8x32xf32>
    tpu.vector_store %arg8[%c16_77, %c0_78], %269 {strides = array<i32>} : memref<64x32xf32, #tpu.memory_space<vmem>>, vector<8x32xf32>,
    %272 = tpu.concatenate %251, %269 in 1 : vector<8x32xf32>, vector<8x32xf32> -> vector<8x64xf32>
    %273 = arith.truncf %272 : vector<8x64xf32> to vector<8x64xbf16>
    %c0_79 = arith.constant 0 : index
    %c0_80 = arith.constant 0 : index
    %274 = vector.load %arg4[%c0_79, %c0_80] : memref<64x256xbf16, #tpu.memory_space<vmem>>, vector<64x256xbf16>
    %cst_81 = arith.constant dense<0.000000e+00> : vector<8x256xf32>
    %275 = tpu.matmul %273, %274, %cst_81 {dimension_numbers = #tpu.dot_dimension_numbers<[1], [0], [0], [1], [0, 0, 1, 1], [], []>} : vector<8x64xbf16>, vector<64x256xbf16>, vector<8x256xf32> -> vector<8x256xf32>
    %c48_82 = arith.constant 48 : index
    %c0_83 = arith.constant 0 : index
    %276 = vector.load %arg6[%c48_82, %c0_83] : memref<64x256xf32, #tpu.memory_space<vmem>>, vector<8x256xf32>
    %c8_84 = arith.constant 8 : index
    %c0_85 = arith.constant 0 : index
    %277 = vector.load %arg6[%c8_84, %c0_85] : memref<64x256xf32, #tpu.memory_space<vmem>>, vector<8x256xf32>
    %278 = vector.extract_strided_slice %276 {offsets = [0, 0], sizes = [8, 128], strides = [1, 1]} : vector<8x256xf32> to vector<8x128xf32>
    %279 = vector.extract_strided_slice %275 {offsets = [0, 0], sizes = [8, 128], strides = [1, 1]} : vector<8x256xf32> to vector<8x128xf32>
    %280 = arith.addf %278, %279 : vector<8x128xf32>
    %281 = arith.negf %280 : vector<8x128xf32>
    %282 = math.exp %281 : vector<8x128xf32>
    %cst_86 = arith.constant 1.000000e+00 : f32
    %283 = vector.broadcast %cst_86 : f32 to vector<8x128xf32>
    %284 = arith.addf %283, %282 : vector<8x128xf32>
    %285 = arith.divf %283, %284 : vector<8x128xf32>
    %286 = math.tanh %280 : vector<8x128xf32>
    %287 = vector.extract_strided_slice %285 {offsets = [0, 0], sizes = [8, 32], strides = [1, 1]} : vector<8x128xf32> to vector<8x32xf32>
    %288 = vector.extract_strided_slice %285 {offsets = [0, 32], sizes = [8, 32], strides = [1, 1]} : vector<8x128xf32> to vector<8x32xf32>
    %289 = vector.extract_strided_slice %286 {offsets = [0, 64], sizes = [8, 32], strides = [1, 1]} : vector<8x128xf32> to vector<8x32xf32>
    %290 = vector.extract_strided_slice %285 {offsets = [0, 96], sizes = [8, 32], strides = [1, 1]} : vector<8x128xf32> to vector<8x32xf32>
    %291 = arith.mulf %288, %249 : vector<8x32xf32>
    %292 = arith.mulf %287, %289 : vector<8x32xf32>
    %293 = arith.addf %291, %292 : vector<8x32xf32>
    %294 = math.tanh %293 : vector<8x32xf32>
    %295 = arith.mulf %290, %294 : vector<8x32xf32>
    %296 = vector.extract_strided_slice %277 {offsets = [0, 128], sizes = [8, 128], strides = [1, 1]} : vector<8x256xf32> to vector<8x128xf32>
    %297 = vector.extract_strided_slice %275 {offsets = [0, 128], sizes = [8, 128], strides = [1, 1]} : vector<8x256xf32> to vector<8x128xf32>
    %298 = arith.addf %296, %297 : vector<8x128xf32>
    %299 = arith.negf %298 : vector<8x128xf32>
    %300 = math.exp %299 : vector<8x128xf32>
    %cst_87 = arith.constant 1.000000e+00 : f32
    %301 = vector.broadcast %cst_87 : f32 to vector<8x128xf32>
    %302 = arith.addf %301, %300 : vector<8x128xf32>
    %303 = arith.divf %301, %302 : vector<8x128xf32>
    %304 = math.tanh %298 : vector<8x128xf32>
    %305 = vector.extract_strided_slice %303 {offsets = [0, 0], sizes = [8, 32], strides = [1, 1]} : vector<8x128xf32> to vector<8x32xf32>
    %306 = vector.extract_strided_slice %303 {offsets = [0, 32], sizes = [8, 32], strides = [1, 1]} : vector<8x128xf32> to vector<8x32xf32>
    %307 = vector.extract_strided_slice %304 {offsets = [0, 64], sizes = [8, 32], strides = [1, 1]} : vector<8x128xf32> to vector<8x32xf32>
    %308 = vector.extract_strided_slice %303 {offsets = [0, 96], sizes = [8, 32], strides = [1, 1]} : vector<8x128xf32> to vector<8x32xf32>
    %309 = arith.mulf %306, %267 : vector<8x32xf32>
    %310 = arith.mulf %305, %307 : vector<8x32xf32>
    %311 = arith.addf %309, %310 : vector<8x32xf32>
    %312 = math.tanh %311 : vector<8x32xf32>
    %313 = arith.mulf %308, %312 : vector<8x32xf32>
    %c48_88 = arith.constant 48 : index
    %c0_89 = arith.constant 0 : index
    %314 = vector.load %arg7[%c48_88, %c0_89] : memref<64x32xf32, #tpu.memory_space<vmem>>, vector<8x32xf32>
    tpu.vector_store %arg7[%c48_88, %c0_89], %295 {strides = array<i32>} : memref<64x32xf32, #tpu.memory_space<vmem>>, vector<8x32xf32>,
    %c8_90 = arith.constant 8 : index
    %c0_91 = arith.constant 0 : index
    %315 = vector.load %arg8[%c8_90, %c0_91] : memref<64x32xf32, #tpu.memory_space<vmem>>, vector<8x32xf32>
    tpu.vector_store %arg8[%c8_90, %c0_91], %313 {strides = array<i32>} : memref<64x32xf32, #tpu.memory_space<vmem>>, vector<8x32xf32>,
    %316 = tpu.concatenate %295, %313 in 1 : vector<8x32xf32>, vector<8x32xf32> -> vector<8x64xf32>
    %317 = arith.truncf %316 : vector<8x64xf32> to vector<8x64xbf16>
    %c0_92 = arith.constant 0 : index
    %c0_93 = arith.constant 0 : index
    %318 = vector.load %arg4[%c0_92, %c0_93] : memref<64x256xbf16, #tpu.memory_space<vmem>>, vector<64x256xbf16>
    %cst_94 = arith.constant dense<0.000000e+00> : vector<8x256xf32>
    %319 = tpu.matmul %317, %318, %cst_94 {dimension_numbers = #tpu.dot_dimension_numbers<[1], [0], [0], [1], [0, 0, 1, 1], [], []>} : vector<8x64xbf16>, vector<64x256xbf16>, vector<8x256xf32> -> vector<8x256xf32>
    %c56_95 = arith.constant 56 : index
    %c0_96 = arith.constant 0 : index
    %320 = vector.load %arg6[%c56_95, %c0_96] : memref<64x256xf32, #tpu.memory_space<vmem>>, vector<8x256xf32>
    %c0_97 = arith.constant 0 : index
    %c0_98 = arith.constant 0 : index
    %321 = vector.load %arg6[%c0_97, %c0_98] : memref<64x256xf32, #tpu.memory_space<vmem>>, vector<8x256xf32>
    %322 = vector.extract_strided_slice %320 {offsets = [0, 0], sizes = [8, 128], strides = [1, 1]} : vector<8x256xf32> to vector<8x128xf32>
    %323 = vector.extract_strided_slice %319 {offsets = [0, 0], sizes = [8, 128], strides = [1, 1]} : vector<8x256xf32> to vector<8x128xf32>
    %324 = arith.addf %322, %323 : vector<8x128xf32>
    %325 = arith.negf %324 : vector<8x128xf32>
    %326 = math.exp %325 : vector<8x128xf32>
    %cst_99 = arith.constant 1.000000e+00 : f32
    %327 = vector.broadcast %cst_99 : f32 to vector<8x128xf32>
    %328 = arith.addf %327, %326 : vector<8x128xf32>
    %329 = arith.divf %327, %328 : vector<8x128xf32>
    %330 = math.tanh %324 : vector<8x128xf32>
    %331 = vector.extract_strided_slice %329 {offsets = [0, 0], sizes = [8, 32], strides = [1, 1]} : vector<8x128xf32> to vector<8x32xf32>
    %332 = vector.extract_strided_slice %329 {offsets = [0, 32], sizes = [8, 32], strides = [1, 1]} : vector<8x128xf32> to vector<8x32xf32>
    %333 = vector.extract_strided_slice %330 {offsets = [0, 64], sizes = [8, 32], strides = [1, 1]} : vector<8x128xf32> to vector<8x32xf32>
    %334 = vector.extract_strided_slice %329 {offsets = [0, 96], sizes = [8, 32], strides = [1, 1]} : vector<8x128xf32> to vector<8x32xf32>
    %335 = arith.mulf %332, %293 : vector<8x32xf32>
    %336 = arith.mulf %331, %333 : vector<8x32xf32>
    %337 = arith.addf %335, %336 : vector<8x32xf32>
    %338 = math.tanh %337 : vector<8x32xf32>
    %339 = arith.mulf %334, %338 : vector<8x32xf32>
    %340 = vector.extract_strided_slice %321 {offsets = [0, 128], sizes = [8, 128], strides = [1, 1]} : vector<8x256xf32> to vector<8x128xf32>
    %341 = vector.extract_strided_slice %319 {offsets = [0, 128], sizes = [8, 128], strides = [1, 1]} : vector<8x256xf32> to vector<8x128xf32>
    %342 = arith.addf %340, %341 : vector<8x128xf32>
    %343 = arith.negf %342 : vector<8x128xf32>
    %344 = math.exp %343 : vector<8x128xf32>
    %cst_100 = arith.constant 1.000000e+00 : f32
    %345 = vector.broadcast %cst_100 : f32 to vector<8x128xf32>
    %346 = arith.addf %345, %344 : vector<8x128xf32>
    %347 = arith.divf %345, %346 : vector<8x128xf32>
    %348 = math.tanh %342 : vector<8x128xf32>
    %349 = vector.extract_strided_slice %347 {offsets = [0, 0], sizes = [8, 32], strides = [1, 1]} : vector<8x128xf32> to vector<8x32xf32>
    %350 = vector.extract_strided_slice %347 {offsets = [0, 32], sizes = [8, 32], strides = [1, 1]} : vector<8x128xf32> to vector<8x32xf32>
    %351 = vector.extract_strided_slice %348 {offsets = [0, 64], sizes = [8, 32], strides = [1, 1]} : vector<8x128xf32> to vector<8x32xf32>
    %352 = vector.extract_strided_slice %347 {offsets = [0, 96], sizes = [8, 32], strides = [1, 1]} : vector<8x128xf32> to vector<8x32xf32>
    %353 = arith.mulf %350, %311 : vector<8x32xf32>
    %354 = arith.mulf %349, %351 : vector<8x32xf32>
    %355 = arith.addf %353, %354 : vector<8x32xf32>
    %356 = math.tanh %355 : vector<8x32xf32>
    %357 = arith.mulf %352, %356 : vector<8x32xf32>
    %c56_101 = arith.constant 56 : index
    %c0_102 = arith.constant 0 : index
    %358 = vector.load %arg7[%c56_101, %c0_102] : memref<64x32xf32, #tpu.memory_space<vmem>>, vector<8x32xf32>
    tpu.vector_store %arg7[%c56_101, %c0_102], %339 {strides = array<i32>} : memref<64x32xf32, #tpu.memory_space<vmem>>, vector<8x32xf32>,
    %c0_103 = arith.constant 0 : index
    %c0_104 = arith.constant 0 : index
    %359 = vector.load %arg8[%c0_103, %c0_104] : memref<64x32xf32, #tpu.memory_space<vmem>>, vector<8x32xf32>
    tpu.vector_store %arg8[%c0_103, %c0_104], %357 {strides = array<i32>} : memref<64x32xf32, #tpu.memory_space<vmem>>, vector<8x32xf32>,
    %c0_105 = arith.constant 0 : index
    %c0_106 = arith.constant 0 : index
    %360 = vector.load %arg7[%c0_105, %c0_106] : memref<64x32xf32, #tpu.memory_space<vmem>>, vector<64x32xf32>
    %c0_107 = arith.constant 0 : index
    %c0_108 = arith.constant 0 : index
    %361 = vector.load %arg8[%c0_107, %c0_108] : memref<64x32xf32, #tpu.memory_space<vmem>>, vector<64x32xf32>
    %362 = tpu.concatenate %360, %361 in 1 : vector<64x32xf32>, vector<64x32xf32> -> vector<64x64xf32>
    %363 = arith.truncf %362 : vector<64x64xf32> to vector<64x64xbf16>
    %c0_109 = arith.constant 0 : index
    %c0_110 = arith.constant 0 : index
    %364 = vector.load %arg5[%c0_109, %c0_110] : memref<64x64xbf16, #tpu.memory_space<vmem>>, vector<64x64xbf16>
    tpu.vector_store %arg5[%c0_109, %c0_110], %363 {strides = array<i32>} : memref<64x64xbf16, #tpu.memory_space<vmem>>, vector<64x64xbf16>,
    return
  }
  func.func @transform_0(%arg0: i32) -> (i32, i32) {
    %c0_i32 = arith.constant 0 : i32
    %c0_i32_0 = arith.constant 0 : i32
    %c0_i32_1 = arith.constant 0 : i32
    return %c0_i32, %c0_i32_0 : i32, i32
  }
  func.func @transform_1(%arg0: i32) -> (i32, i32) {
    %c0_i32 = arith.constant 0 : i32
    %c0_i32_0 = arith.constant 0 : i32
    %c0_i32_1 = arith.constant 0 : i32
    return %c0_i32, %c0_i32_0 : i32, i32
  }
  func.func @transform_2(%arg0: i32) -> (i32, i32) {
    %c0_i32 = arith.constant 0 : i32
    %c0_i32_0 = arith.constant 0 : i32
    %c0_i32_1 = arith.constant 0 : i32
    return %c0_i32, %c0_i32_0 : i32, i32
  }
  func.func @transform_3(%arg0: i32) -> (i32, i32) {
    %c0_i32 = arith.constant 0 : i32
    %c0_i32_0 = arith.constant 0 : i32
    %c0_i32_1 = arith.constant 0 : i32
    return %c0_i32, %c0_i32_0 : i32, i32
  }
  func.func @transform_4(%arg0: i32) -> (i32, i32) {
    %c0_i32 = arith.constant 0 : i32
    %c0_i32_0 = arith.constant 0 : i32
    %c0_i32_1 = arith.constant 0 : i32
    return %c0_i32, %c0_i32_0 : i32, i32
  }
}

</mosaic_0001>

<bundles_post_ra>
// kernel: tpu_custom_call.1
= control target key start
LH: loop header
LB: loop body
LE: loop exit
PB: predicated region body
PF: predicated region fallthrough
CT: control target
= control target key end

     0   :  { %9 = vsyncpa [#allocation6], 0  ;;  %s2575_s0 = inlined_call_operand.vmem [shape: bf16[64,32], index: 0, kind: input, shape index: {}]   ;;  %s2576_s1 = inlined_call_operand.vmem [shape: bf16[32,256], index: 1, kind: input, shape index: {}]   ;;  %s2577_s2 = inlined_call_operand.vmem [shape: f32[1,256], index: 2, kind: input, shape index: {}]   ;;  %s2578_s3 = inlined_call_operand.hbm [shape: bf16[64,256], index: 3, kind: input, shape index: {}]   ;;  %s2579_s4 = inlined_call_operand.hbm [shape: bf16[64,64], index: 4, kind: output, shape index: {}]  }
   0x1   :  { %10 = vsyncpa [#allocation7], 0  ;;  %s21_s17 = sshll.u32 %s2578_s3, 4  ;;  %s2235_s18 = smov [#allocation5]   ;;  %s22_s17 = int_to_ptr.hbm [resolvable:$true] %s21_s17 }
   0x2   :  { %s23_s19 = sshll.u32 %s2235_s18, 4  ;;  %s2236_s20 = smov 128   ;;  %s24_s19 = int_to_ptr.vmem [resolvable:$true] %s23_s19 }
   0x3   :  { %s2237_s21 = smov 8  }
   0x4   :  { %29 = dma.hbm_to_vmem [thread:$0]  %s22_s17, 1024, %s24_s19, [#allocation6], %s2236_s20, %s2236_s20, %s2237_s21  }
   0x5   :  { %2231 = dma.done.wait [#allocation6], 1024  }
   0x6   :  { %2232 = vsyncadd [#allocation6], 4294966272  ;;  %v1961_v0 = vld [vmem:[%s2576_s1 + $0x14] sm:$0xf]  ;;  %v1657_v1 = vld [vmem:[%s2576_s1 + $0x18] sm:$0xf0] }
   0x7   :  { %v1695_v2 = vld [vmem:[#allocation5 + $0x30] sm:$0xf]  ;;  %v1660_v3 = vor.u32 %v1961_v0, %v1657_v1  ;;  %v1970_v4 = vld [vmem:[#allocation5 + $0x34] sm:$0xf0]  ;;  %v1959_v5 = vld [vmem:[%s2576_s1 + $0x4] sm:$0xf] }
   0x8   :  { %v1649_v6 = vld [vmem:[%s2576_s1 + $0x8] sm:$0xf0]  ;;  %v1696_v7 = vor.u32 %v1970_v4, %v1695_v2  ;;  %v1687_v8 = vld [vmem:[#allocation5 + $0x20] sm:$0xf]  ;;  %v1968_v9 = vld [vmem:[#allocation5 + $0x24] sm:$0xf0] }
   0x9   :  { %141 = vmatpush.bf16.msra.mxu1 %v1660_v3  ;;  %v1652_v10 = vor.u32 %v1959_v5, %v1649_v6  ;;  %v1655_v11 = vld [vmem:[%s2576_s1 + $0x10] sm:$0xf]  ;;  %v1688_v12 = vor.u32 %v1968_v9, %v1687_v8  ;;  %v1962_v14 = vld [vmem:[%s2576_s1 + $0x14] sm:$0xf0]  ;;  %v1647_v17 = vld [vmem:[%s2576_s1] sm:$0xf] }
   0xa   :  { %237 = vmatpush.bf16.msra.mxu2 %v1696_v7  ;;  %v1679_v13 = vld [vmem:[#allocation5 + $0x10] sm:$0xf]  ;;  %v1966_v15 = vld [vmem:[#allocation5 + $0x14] sm:$0xf0]  ;;  %v1656_v16 = vor.u32 %v1962_v14, %v1655_v11  ;;  %v1960_v18 = vld [vmem:[%s2576_s1 + $0x4] sm:$0xf0] }
   0xb   :  { %v1955_v19 = vld [vmem:[%s2575_s0] sm:$0xff]  ;;  %v1969_v20 = vld [vmem:[#allocation5 + $0x34] sm:$0xf]  ;;  %v1697_v21 = vld [vmem:[#allocation5 + $0x38] sm:$0xf0]  ;;  %vm93_vm0 = vcmask 261120   ;;  %v1648_v22 = vor.u32 %v1960_v18, %v1647_v17  ;;  %v1680_v24 = vor.u32 %v1966_v15, %v1679_v13 }
   0xc   :  { %112 = vmatpush.bf16.msra.mxu0 %v1656_v16  ;;  %v1700_v23 = vor.u32 %v1969_v20, %v1697_v21  ;;  %v1671_v25 = vld [vmem:[#allocation5] sm:$0xf]  ;;  %v1964_v26 = vld [vmem:[#allocation5 + $0x4] sm:$0xf0]  ;;  %v1967_v27 = vld [vmem:[#allocation5 + $0x24] sm:$0xf] }
   0xd   :  { %142 = vmatpush.bf16.msra.mxu1 %v1652_v10  ;;  %v1689_v28 = vld [vmem:[#allocation5 + $0x28] sm:$0xf0]  ;;  %v1965_v30 = vld [vmem:[#allocation5 + $0x14] sm:$0xf]  ;;  %v1681_v31 = vld [vmem:[#allocation5 + $0x18] sm:$0xf0]  ;;  %v1672_v32 = vor.u32 %v1964_v26, %v1671_v25 }
   0xe   :  { %238 = vmatpush.bf16.msra.mxu2 %v1688_v12  ;;  %250 = vmatpush.bf16.msra.mxu3 %v1700_v23  ;;  %v1692_v29 = vor.u32 %v1967_v27, %v1689_v28  ;;  %v1684_v33 = vor.u32 %v1965_v30, %v1681_v31  ;;  %v1963_v34 = vld [vmem:[#allocation5 + $0x4] sm:$0xf]  ;;  %v1673_v35 = vld [vmem:[#allocation5 + $0x8] sm:$0xf0]  ;;  %v2238_v37 = vmov 0.0|0.0   ;;  %v1957_v39 = vld [vmem:[%s2575_s0 + $0x10] sm:$0xff] }
   0xf   :  { %v1676_v36 = vor.u32 %v1963_v34, %v1673_v35  ;;  %v1956_v38 = vld [vmem:[%s2575_s0 + $0x8] sm:$0xff]  ;;  %v1958_v40 = vld [vmem:[%s2575_s0 + $0x18] sm:$0xff]  ;;  %v47_v41 = vld [vmem:[%s2577_s2] sm:$0x3]  ;;  %s2239_s0 = smov 64   ;;  %s2240_s2 = smov 32  }
  0x10   :  { %1665 = vmatmul.msk.bf16.vlgmr.msra.gmra.mxu1 %vm93_vm0, %v1955_v19  ;;  %113 = vmatpush.bf16.msra.mxu0 %v1648_v22  ;;  %v50_v42 = vperm.slane %v47_v41, 1  ;;  %v2320_v46 = vperm.slane %v47_v41, 0  ;;  %vm229_vm9 = vcmask 523264   ;;  %s2241_s20 = smov [#allocation8]   ;;  %s1616_s24 = sshll.u32 %s2579_s4, 4  ;;  %s1617_s24 = int_to_ptr.hbm [resolvable:$true] %s1616_s24 }
  0x11   :  { %s1614_s21 = sshll.u32 %s2241_s20, 4  ;;  %s2242_s25 = smov 4   ;;  %s1615_s21 = int_to_ptr.vmem [resolvable:$true] %s1614_s21 }
  0x12   :  { %239 = vmatpush.bf16.msra.mxu2 %v1680_v24  ;;  %251 = vmatpush.bf16.msra.mxu3 %v1692_v29 }
  0x13   :  { %1661 = vmatmul.msk.bf16.vlgmr.msra.gmra.mxu0 %vm93_vm0, %v1955_v19 }
  0x16   :  { %240 = vmatpush.bf16.msra.mxu2 %v1672_v32  ;;  %252 = vmatpush.bf16.msra.mxu3 %v1684_v33 }
  0x19   :  { %241 = vmatmul.bf16.vlgmr.msra.gmra.mxu2 %v2238_v37 }
  0x1a   :  { %253 = vmatpush.bf16.msra.mxu3 %v1676_v36 }
  0x1d   :  { %254 = vmatmul.bf16.vlgmr.msra.gmra.mxu3 %v2238_v37 }
  0x20   :  { %1666 = vmatmul.msk.bf16.gmra.mxu1 %vm93_vm0, %v1956_v38 }
  0x23   :  { %1662 = vmatmul.msk.bf16.gmra.mxu0 %vm93_vm0, %v1956_v38 }
  0x30   :  { %1667 = vmatmul.msk.bf16.gmra.mxu1 %vm93_vm0, %v1957_v39 }
  0x33   :  { %1663 = vmatmul.msk.bf16.gmra.mxu0 %vm93_vm0, %v1957_v39 }
  0x40   :  { %1668 = vmatmul.msk.bf16.gmra.mxu1 %vm93_vm0, %v1958_v40 }
  0x43   :  { %1664 = vmatmul.msk.bf16.gmra.mxu0 %vm93_vm0, %v1958_v40 }
  0x8d   :  { %v144_v43 = vpop.f32.mrf.mxu1 }
  0x8e   :  { %v2318_v44 = vadd.f32 %v144_v43, %v50_v42 }
  0x90   :  { %v115_v48 = vpop.f32.mrf.mxu0 }
  0x91   :  { %v116_v49 = vadd.f32 %v115_v48, %v2320_v46 }
  0x95   :  { %v146_v45 = vpop.f32.mrf.mxu1 }
  0x96   :  { %v2322_v47 = vadd.f32 %v146_v45, %v50_v42 }
  0x9c   :  { %v242_v50 = vpop.f32.mrf.mxu2 }
  0x9d   :  { %v261_v51 = vadd.f32 %v242_v50, %v116_v49  ;;  %v149_v52 = vpop.f32.mrf.mxu1 }
  0x9e   :  { %v2325_v53 = vadd.f32 %v149_v52, %v50_v42  ;;  %v1731_v52 = vld [vmem:[#allocation5 + $0x38] sm:$0xf0] }
  0x9f   :  { %2055 = vtanh.f32 %v261_v51  ;;  %v1701_v6 = vmul.f32 -1.442695, %v261_v51  ;;  %v1977_v51 = vld [vmem:[#allocation5 + $0x34] sm:$0xf] }
  0xa0   :  { %v255_v54 = vpop.f32.mrf.mxu3 }
  0xa4   :  { %v244_v55 = vpop.f32.mrf.mxu2 }
  0xa5   :  { %v2056_v56 = vpop.eup %2055  ;;  %v151_v57 = vpop.f32.mrf.mxu1  ;;  %v1734_v55 = vor.u32 %v1977_v51, %v1731_v52 }
  0xa6   :  { %v2327_v58 = vadd.f32 %v151_v57, %v50_v42  ;;  %284 = vrot.lane.b32.xlu0 %v2056_v56, %s2239_s0  ;;  %v1978_v56 = vld [vmem:[#allocation5 + $0x34] sm:$0xf0]  ;;  %v1975_v57 = vld [vmem:[#allocation5 + $0x24] sm:$0xf] }
  0xa7   :  { %420 = vmatpush.bf16.msrb.mxu3 %v1734_v55 }
  0xa8   :  { %v257_v59 = vpop.f32.mrf.mxu3 }
  0xa9   :  { %v1723_v59 = vld [vmem:[#allocation5 + $0x28] sm:$0xf0] }
  0xad   :  { %v154_v60 = vpop.f32.mrf.mxu1 }
  0xae   :  { %v2330_v61 = vadd.f32 %v154_v60, %v50_v42 }
  0xb5   :  { %v156_v62 = vpop.f32.mrf.mxu1 }
  0xb6   :  { %v2332_v63 = vadd.f32 %v156_v62, %v50_v42  ;;  %v1721_v62 = vld [vmem:[#allocation5 + $0x20] sm:$0xf] }
  0xbd   :  { %v159_v0 = vpop.f32.mrf.mxu1 }
  0xbe   :  { %v2334_v1 = vadd.f32 %v159_v0, %v50_v42  ;;  %v1976_v0 = vld [vmem:[#allocation5 + $0x24] sm:$0xf0] }
  0xc5   :  { %v161_v2 = vpop.f32.mrf.mxu1 }
  0xc6   :  { %v162_v3 = vadd.f32 %v161_v2, %v50_v42  ;;  %v1726_v2 = vor.u32 %v1975_v57, %v1723_v59 }
  0xc8   :  { %v299_v4 = vadd.f32 %v255_v54, %v162_v3  ;;  %v1729_v54 = vld [vmem:[#allocation5 + $0x30] sm:$0xf]  ;;  %v1722_v3 = vor.u32 %v1976_v0, %v1721_v62  ;;  %421 = vmatpush.bf16.msrb.mxu3 %v1726_v2 }
  0xc9   :  { %v1730_v60 = vor.u32 %v1978_v56, %v1729_v54 }
  0xca   :  { %2057 = vtanh.f32 %v299_v4  ;;  %v1702_v18 = vmul.f32 -1.442695, %v299_v4  ;;  %v1973_v4 = vld [vmem:[#allocation5 + $0x14] sm:$0xf] }
  0xcb   :  { %2059 = vpow2.f32 %v1701_v6  ;;  %407 = vmatpush.bf16.msrb.mxu2 %v1730_v60  ;;  %v1713_v6 = vld [vmem:[#allocation5 + $0x10] sm:$0xf] }
  0xcf   :  { %408 = vmatpush.bf16.msrb.mxu2 %v1722_v3 }
  0xd0   :  { %v2058_v5 = vpop.eup %2057 }
  0xd1   :  { %322 = vrot.lane.b32.xlu0 %v2058_v5, %s2239_s0  ;;  %v2060_v7 = vpop.eup %2059  ;;  %v1715_v5 = vld [vmem:[#allocation5 + $0x18] sm:$0xf0] }
  0xd2   :  { %v265_v8 = vadd.f32 1.0, %v2060_v7  ;;  %v1974_v7 = vld [vmem:[#allocation5 + $0x14] sm:$0xf0] }
  0xd4   :  { %2061 = vrcp.f32 %v265_v8  ;;  %vm271_vm1 = vweird.f32 %v265_v8  ;;  %v277_v13 = vand.u32 2147483648, %v265_v8  ;;  %v275_v15 = vand.u32 2147483647, %v265_v8 }
  0xd5   :  { %2063 = vpow2.f32 %v1702_v18 }
  0xd6   :  { %v278_v16 = vor.u32 1.1754944e-38, %v277_v13  ;;  %vm276_vm4 = vcmp.eq.f32.partialorder %v275_v15, 8.507059e+37  ;;  %v1972_v15 = vld [vmem:[#allocation5 + $0x4] sm:$0xf0] }
  0xda   :  { %v2062_v9 = vpop.eup %2061 }
  0xdb   :  { %v267_v10 = vmul.f32 %v2062_v9, %v265_v8  ;;  %vm272_vm2 = vweird.f32 %v2062_v9  ;;  %v2064_v22 = vpop.eup %2063  ;;  %v1718_v8 = vor.u32 %v1973_v4, %v1715_v5 }
  0xdc   :  { %vm273_vm3 = vmor %vm271_vm1, %vm272_vm2  ;;  %v303_v23 = vadd.f32 1.0, %v2064_v22 }
  0xdd   :  { %v268_v11 = vsub.f32 1.0, %v267_v10  ;;  %v1971_v10 = vld [vmem:[#allocation5 + $0x4] sm:$0xf]  ;;  %422 = vmatpush.bf16.msrb.mxu3 %v1718_v8 }
  0xde   :  { %2065 = vrcp.f32 %v303_v23  ;;  %v315_v29 = vand.u32 2147483648, %v303_v23  ;;  %vm309_vm6 = vweird.f32 %v303_v23  ;;  %v313_v30 = vand.u32 2147483647, %v303_v23 }
  0xdf   :  { %v269_v12 = vmul.f32 %v2062_v9, %v268_v11  ;;  %v1707_v11 = vld [vmem:[#allocation5 + $0x8] sm:$0xf0] }
  0xe0   :  { %v316_v32 = vor.u32 1.1754944e-38, %v315_v29  ;;  %vm314_vm8 = vcmp.eq.f32.partialorder %v313_v30, 8.507059e+37 }
  0xe1   :  { %v270_v14 = vadd.f32 %v2062_v9, %v269_v12  ;;  %v1710_v12 = vor.u32 %v1971_v10, %v1707_v11 }
  0xe3   :  { %v274_v17 = vsel %vm273_vm3, %v2062_v9, %v270_v14  ;;  %v1714_v9 = vor.u32 %v1974_v7, %v1713_v6  ;;  %423 = vmatpush.bf16.msrb.mxu3 %v1710_v12  ;;  %v1705_v14 = vld [vmem:[#allocation5] sm:$0xf] }
  0xe4   :  { %v279_v20 = vsel %vm276_vm4, %v278_v16, %v274_v17  ;;  %v2066_v24 = vpop.eup %2065  ;;  %v1706_v16 = vor.u32 %v1972_v15, %v1705_v14 }
  0xe5   :  { %v305_v25 = vmul.f32 %v2066_v24, %v303_v23  ;;  %vm310_vm5 = vweird.f32 %v2066_v24  ;;  %v282_v36 = vmul.f32 0.0, %v279_v20  ;;  %409 = vmatpush.bf16.msrb.mxu2 %v1714_v9 }
  0xe6   :  { %vm311_vm7 = vmor %vm309_vm6, %vm310_vm5 }
  0xe7   :  { %v306_v26 = vsub.f32 1.0, %v305_v25 }
  0xe9   :  { %v307_v27 = vmul.f32 %v2066_v24, %v306_v26  ;;  %410 = vmatpush.bf16.msrb.mxu2 %v1706_v16  ;;  %v1765_v16 = vld [vmem:[#allocation5 + $0x30] sm:$0xf] }
  0xeb   :  { %v308_v28 = vadd.f32 %v2066_v24, %v307_v27 }
  0xed   :  { %v312_v31 = vsel %vm311_vm7, %v2066_v24, %v308_v28 }
  0xee   :  { %v317_v33 = vsel %vm314_vm8, %v316_v32, %v312_v31 }
  0xef   :  { %v320_v40 = vmul.f32 0.0, %v317_v33 }
 0x118   :  { %v285_v19 = vpop.permute.xlu0 %284 }
 0x119   :  { %v287_v21 = vmul.f32 %v285_v19, %v279_v20 }
 0x11b   :  { %289 = vrot.lane.b32.xlu1 %v287_v21, %s2240_s2 }
 0x143   :  { %v323_v34 = vpop.permute.xlu0 %322 }
 0x144   :  { %v325_v35 = vmul.f32 %v323_v34, %v317_v33 }
 0x146   :  { %327 = vrot.lane.b32.xlu1 %v325_v35, %s2240_s2 }
 0x18d   :  { %v290_v37 = vpop.permute.xlu1 %289 }
 0x18e   :  { %v2339_v38 = vadd.f32 %v290_v37, %v282_v36 }
 0x190   :  { %2067 = vtanh.f32 %v2339_v38 }
 0x196   :  { %v2068_v39 = vpop.eup %2067 }
 0x197   :  { %295 = vrot.lane.b32.xlu2 %v2068_v39, %s2239_s0 }
 0x1b8   :  { %v328_v41 = vpop.permute.xlu1 %327 }
 0x1b9   :  { %v2343_v42 = vadd.f32 %v328_v41, %v320_v40 }
 0x1bb   :  { %2069 = vtanh.f32 %v2343_v42 }
 0x1c1   :  { %v2070_v43 = vpop.eup %2069 }
 0x1c2   :  { %333 = vrot.lane.b32.xlu2 %v2070_v43, %s2239_s0 }
 0x1f1   :  { %v296_v45 = vpop.permute.xlu2 %295 }
 0x1f2   :  { %v298_v48 = vmul.f32 %v296_v45, %v279_v20  ;;  %v117_v20 = vpop.f32.mrf.mxu0 }
 0x1f3   :  { %v118_v21 = vadd.f32 %v117_v20, %v2320_v46  ;;  %v1767_v20 = vld [vmem:[#allocation5 + $0x38] sm:$0xf0] }
 0x1f4   :  { %338 = vrot.lane.b32.xlu0 %v298_v48, %s2240_s2 }
 0x21c   :  { %v334_v49 = vpop.permute.xlu2 %333 }
 0x21d   :  { %v2348_v50 = vmul.f32 %v334_v49, %v317_v33 }
 0x21f   :  { %347 = vrot.lane.b32.xlu1 %v2348_v50, %s2239_s0 }
 0x266   :  { %v339_v13 = vpop.permute.xlu0 %338 }
 0x267   :  { %341 = vst.msk [vmem:[#allocation3] sm:$0xff] %vm93_vm0, %v339_v13 }
 0x291   :  { %v348_v17 = vpop.permute.xlu1 %347 }
 0x292   :  { %v350_v18 = vsel %vm93_vm0, %v339_v13, %v348_v17  ;;  %v1986_v17 = vld [vmem:[#allocation5 + $0x34] sm:$0xf0] }
 0x293   :  { %v351_v19 = vpack.c.bf16 %v350_v18, %v350_v18  ;;  %v1985_v18 = vld [vmem:[#allocation5 + $0x34] sm:$0xf] }
 0x295   :  { %1735 = vmatmul.msk.bf16.vlgmr.msrb.gmra.mxu2 %vm229_vm9, %v351_v19  ;;  %1736 = vmatmul.msk.bf16.vlgmr.msrb.gmra.mxu3 %vm229_vm9, %v351_v19  ;;  %v1766_v19 = vor.u32 %v1986_v17, %v1765_v16 }
 0x297   :  { %577 = vmatpush.bf16.msra.mxu2 %v1766_v19 }
 0x318   :  { %v412_v22 = vpop.f32.mrf.mxu2  ;;  %v425_v23 = vpop.f32.mrf.mxu3 }
 0x319   :  { %v431_v24 = vadd.f32 %v412_v22, %v118_v21  ;;  %v469_v25 = vadd.f32 %v425_v23, %v2334_v1  ;;  %v1757_v21 = vld [vmem:[#allocation5 + $0x20] sm:$0xf]  ;;  %v1984_v22 = vld [vmem:[#allocation5 + $0x24] sm:$0xf0]  ;;  %v1770_v23 = vor.u32 %v1985_v18, %v1767_v20 }
 0x31b   :  { %2071 = vtanh.f32 %v431_v24  ;;  %v1737_v30 = vmul.f32 -1.442695, %v431_v24  ;;  %v1738_v34 = vmul.f32 -1.442695, %v469_v25  ;;  %v1983_v24 = vld [vmem:[#allocation5 + $0x24] sm:$0xf]  ;;  %590 = vmatpush.bf16.msra.mxu3 %v1770_v23 }
 0x31c   :  { %2073 = vtanh.f32 %v469_v25  ;;  %v1759_v25 = vld [vmem:[#allocation5 + $0x28] sm:$0xf0] }
 0x31d   :  { %2075 = vpow2.f32 %v1737_v30  ;;  %v1981_v30 = vld [vmem:[#allocation5 + $0x14] sm:$0xf] }
 0x320   :  { %v414_v26 = vpop.f32.mrf.mxu2  ;;  %v427_v27 = vpop.f32.mrf.mxu3 }
 0x321   :  { %v2072_v28 = vpop.eup %2071  ;;  %v1758_v26 = vor.u32 %v1984_v22, %v1757_v21  ;;  %v1762_v27 = vor.u32 %v1983_v24, %v1759_v25 }
 0x322   :  { %v2074_v29 = vpop.eup %2073  ;;  %454 = vrot.lane.b32.xlu2 %v2072_v28, %s2239_s0  ;;  %v1749_v28 = vld [vmem:[#allocation5 + $0x10] sm:$0xf] }
 0x323   :  { %492 = vrot.lane.b32.xlu0 %v2074_v29, %s2239_s0  ;;  %v2076_v31 = vpop.eup %2075  ;;  %v1982_v29 = vld [vmem:[#allocation5 + $0x14] sm:$0xf0]  ;;  %578 = vmatpush.bf16.msra.mxu2 %v1758_v26 }
 0x324   :  { %v435_v32 = vadd.f32 1.0, %v2076_v31  ;;  %v1751_v31 = vld [vmem:[#allocation5 + $0x18] sm:$0xf0]  ;;  %591 = vmatpush.bf16.msra.mxu3 %v1762_v27 }
 0x326   :  { %2077 = vrcp.f32 %v435_v32  ;;  %v447_v41 = vand.u32 2147483648, %v435_v32  ;;  %vm441_vm11 = vweird.f32 %v435_v32  ;;  %v445_v43 = vand.u32 2147483647, %v435_v32 }
 0x327   :  { %2079 = vpow2.f32 %v1738_v34  ;;  %v1741_v34 = vld [vmem:[#allocation5] sm:$0xf] }
 0x328   :  { %v448_v48 = vor.u32 1.1754944e-38, %v447_v41  ;;  %vm446_vm13 = vcmp.eq.f32.partialorder %v445_v43, 8.507059e+37 }
 0x32c   :  { %v2078_v33 = vpop.eup %2077 }
 0x32d   :  { %v437_v35 = vmul.f32 %v2078_v33, %v435_v32  ;;  %v2080_v37 = vpop.eup %2079  ;;  %vm442_vm10 = vweird.f32 %v2078_v33  ;;  %v1750_v32 = vor.u32 %v1982_v29, %v1749_v28 }
 0x32e   :  { %v473_v39 = vadd.f32 1.0, %v2080_v37  ;;  %vm443_vm12 = vmor %vm441_vm11, %vm442_vm10  ;;  %v1743_v37 = vld [vmem:[#allocation5 + $0x8] sm:$0xf0] }
 0x32f   :  { %v438_v1 = vsub.f32 1.0, %v437_v35  ;;  %v1980_v35 = vld [vmem:[#allocation5 + $0x4] sm:$0xf0]  ;;  %579 = vmatpush.bf16.msra.mxu2 %v1750_v32 }
 0x330   :  { %2081 = vrcp.f32 %v473_v39  ;;  %v485_v60 = vand.u32 2147483648, %v473_v39  ;;  %vm479_vm15 = vweird.f32 %v473_v39  ;;  %v483_v62 = vand.u32 2147483647, %v473_v39 }
 0x331   :  { %v439_v36 = vmul.f32 %v2078_v33, %v438_v1  ;;  %v1742_v1 = vor.u32 %v1980_v35, %v1741_v34 }
 0x332   :  { %v486_v2 = vor.u32 1.1754944e-38, %v485_v60  ;;  %vm484_vm2 = vcmp.eq.f32.partialorder %v483_v62, 8.507059e+37 }
 0x333   :  { %v440_v40 = vadd.f32 %v2078_v33, %v439_v36  ;;  %580 = vmatpush.bf16.msra.mxu2 %v1742_v1  ;;  %v1979_v36 = vld [vmem:[#allocation5 + $0x4] sm:$0xf] }
 0x335   :  { %v444_v45 = vsel %vm443_vm12, %v2078_v33, %v440_v40  ;;  %v1754_v33 = vor.u32 %v1981_v30, %v1751_v31 }
 0x336   :  { %v449_v51 = vsel %vm446_vm13, %v448_v48, %v444_v45  ;;  %v2082_v54 = vpop.eup %2081  ;;  %v120_v48 = vpop.f32.mrf.mxu0 }
 0x337   :  { %v475_v55 = vmul.f32 %v2082_v54, %v473_v39  ;;  %vm480_vm14 = vweird.f32 %v2082_v54  ;;  %v452_v6 = vmul.f32 %v449_v51, %v2339_v38  ;;  %592 = vmatpush.bf16.msra.mxu3 %v1754_v33  ;;  %v1746_v39 = vor.u32 %v1979_v36, %v1743_v37 }
 0x338   :  { %vm481_vm1 = vmor %vm479_vm15, %vm480_vm14 }
 0x339   :  { %v476_v56 = vsub.f32 1.0, %v475_v55 }
 0x33b   :  { %v477_v57 = vmul.f32 %v2082_v54, %v476_v56  ;;  %593 = vmatpush.bf16.msra.mxu3 %v1746_v39 }
 0x33d   :  { %v478_v59 = vadd.f32 %v2082_v54, %v477_v57 }
 0x33f   :  { %v482_v0 = vsel %vm481_vm1, %v2082_v54, %v478_v59 }
 0x340   :  { %v487_v4 = vsel %vm484_vm2, %v486_v2, %v482_v0 }
 0x341   :  { %v490_v7 = vmul.f32 %v487_v4, %v2343_v42 }
 0x37c   :  { %v455_v49 = vpop.permute.xlu2 %454 }
 0x37d   :  { %v457_v52 = vmul.f32 %v455_v49, %v449_v51  ;;  %v121_v49 = vadd.f32 %v120_v48, %v2320_v46  ;;  %v1803_v48 = vld [vmem:[#allocation5 + $0x38] sm:$0xf0] }
 0x37f   :  { %459 = vrot.lane.b32.xlu1 %v457_v52, %s2240_s2 }
 0x395   :  { %v493_v3 = vpop.permute.xlu0 %492 }
 0x396   :  { %v495_v5 = vmul.f32 %v493_v3, %v487_v4 }
 0x398   :  { %497 = vrot.lane.b32.xlu2 %v495_v5, %s2240_s2 }
 0x3f1   :  { %v460_v8 = vpop.permute.xlu1 %459 }
 0x3f2   :  { %v498_v9 = vpop.permute.xlu2 %497  ;;  %v2364_v10 = vadd.f32 %v460_v8, %v452_v6 }
 0x3f3   :  { %v2366_v11 = vadd.f32 %v498_v9, %v490_v7 }
 0x3f4   :  { %2083 = vtanh.f32 %v2364_v10 }
 0x3f5   :  { %2085 = vtanh.f32 %v2366_v11 }
 0x3fa   :  { %v2084_v12 = vpop.eup %2083 }
 0x3fb   :  { %v2086_v13 = vpop.eup %2085  ;;  %465 = vrot.lane.b32.xlu0 %v2084_v12, %s2239_s0 }
 0x3fc   :  { %503 = vrot.lane.b32.xlu1 %v2086_v13, %s2239_s0 }
 0x46d   :  { %v466_v14 = vpop.permute.xlu0 %465 }
 0x46e   :  { %v504_v38 = vpop.permute.xlu1 %503  ;;  %v468_v15 = vmul.f32 %v466_v14, %v449_v51 }
 0x46f   :  { %v2372_v42 = vmul.f32 %v504_v38, %v487_v4 }
 0x470   :  { %508 = vrot.lane.b32.xlu2 %v468_v15, %s2240_s2 }
 0x471   :  { %517 = vrot.lane.b32.xlu0 %v2372_v42, %s2239_s0 }
 0x4ca   :  { %v509_v40 = vpop.permute.xlu2 %508 }
 0x4cb   :  { %511 = vst.msk [vmem:[#allocation3 + $0x8] sm:$0xff] %vm93_vm0, %v509_v40 }
 0x4e3   :  { %v518_v41 = vpop.permute.xlu0 %517 }
 0x4e4   :  { %v520_v43 = vsel %vm93_vm0, %v509_v40, %v518_v41  ;;  %v1801_v41 = vld [vmem:[#allocation5 + $0x30] sm:$0xf] }
 0x4e5   :  { %v521_v45 = vpack.c.bf16 %v520_v43, %v520_v43  ;;  %v1993_v43 = vld [vmem:[#allocation5 + $0x34] sm:$0xf] }
 0x4e7   :  { %1771 = vmatmul.msk.bf16.vlgmr.msra.gmra.mxu2 %vm229_vm9, %v521_v45  ;;  %1772 = vmatmul.msk.bf16.vlgmr.msra.gmra.mxu3 %vm229_vm9, %v521_v45 }
 0x56a   :  { %v582_v51 = vpop.f32.mrf.mxu2  ;;  %v595_v52 = vpop.f32.mrf.mxu3 }
 0x56b   :  { %v601_v54 = vadd.f32 %v582_v51, %v121_v49  ;;  %v639_v55 = vadd.f32 %v595_v52, %v2332_v63  ;;  %v1793_v49 = vld [vmem:[#allocation5 + $0x20] sm:$0xf]  ;;  %v1992_v51 = vld [vmem:[#allocation5 + $0x24] sm:$0xf0]  ;;  %v1806_v52 = vor.u32 %v1993_v43, %v1803_v48 }
 0x56d   :  { %2087 = vtanh.f32 %v601_v54  ;;  %v1774_v62 = vmul.f32 -1.442695, %v639_v55  ;;  %v1773_v4 = vmul.f32 -1.442695, %v601_v54  ;;  %v1991_v54 = vld [vmem:[#allocation5 + $0x24] sm:$0xf]  ;;  %760 = vmatpush.bf16.msrb.mxu3 %v1806_v52 }
 0x56e   :  { %2089 = vtanh.f32 %v639_v55  ;;  %v1795_v55 = vld [vmem:[#allocation5 + $0x28] sm:$0xf0] }
 0x56f   :  { %2091 = vpow2.f32 %v1774_v62  ;;  %v1989_v62 = vld [vmem:[#allocation5 + $0x14] sm:$0xf] }
 0x572   :  { %v584_v56 = vpop.f32.mrf.mxu2  ;;  %v597_v57 = vpop.f32.mrf.mxu3 }
 0x573   :  { %v2088_v59 = vpop.eup %2087  ;;  %v1794_v56 = vor.u32 %v1992_v51, %v1793_v49  ;;  %v1798_v57 = vor.u32 %v1991_v54, %v1795_v55 }
 0x574   :  { %v2090_v60 = vpop.eup %2089  ;;  %624 = vrot.lane.b32.xlu1 %v2088_v59, %s2239_s0  ;;  %v1785_v59 = vld [vmem:[#allocation5 + $0x10] sm:$0xf] }
 0x575   :  { %662 = vrot.lane.b32.xlu2 %v2090_v60, %s2239_s0  ;;  %v2092_v0 = vpop.eup %2091  ;;  %v1990_v60 = vld [vmem:[#allocation5 + $0x14] sm:$0xf0]  ;;  %761 = vmatpush.bf16.msrb.mxu3 %v1798_v57 }
 0x576   :  { %v643_v2 = vadd.f32 1.0, %v2092_v0  ;;  %v1787_v0 = vld [vmem:[#allocation5 + $0x18] sm:$0xf0] }
 0x578   :  { %2093 = vrcp.f32 %v643_v2  ;;  %v655_v12 = vand.u32 2147483648, %v643_v2  ;;  %vm649_vm4 = vweird.f32 %v643_v2  ;;  %v653_v13 = vand.u32 2147483647, %v643_v2 }
 0x579   :  { %2095 = vpow2.f32 %v1773_v4  ;;  %v1777_v4 = vld [vmem:[#allocation5] sm:$0xf] }
 0x57a   :  { %v656_v38 = vor.u32 1.1754944e-38, %v655_v12  ;;  %vm654_vm6 = vcmp.eq.f32.partialorder %v653_v13, 8.507059e+37 }
 0x57e   :  { %v2094_v3 = vpop.eup %2093 }
 0x57f   :  { %v645_v5 = vmul.f32 %v2094_v3, %v643_v2  ;;  %v2096_v6 = vpop.eup %2095  ;;  %vm650_vm3 = vweird.f32 %v2094_v3  ;;  %v1786_v2 = vor.u32 %v1990_v60, %v1785_v59 }
 0x580   :  { %v605_v8 = vadd.f32 1.0, %v2096_v6  ;;  %vm651_vm5 = vmor %vm649_vm4, %vm650_vm3  ;;  %v1779_v6 = vld [vmem:[#allocation5 + $0x8] sm:$0xf0] }
 0x581   :  { %v646_v63 = vsub.f32 1.0, %v645_v5  ;;  %v1988_v5 = vld [vmem:[#allocation5 + $0x4] sm:$0xf0] }
 0x582   :  { %2097 = vrcp.f32 %v605_v8  ;;  %v617_v23 = vand.u32 2147483648, %v605_v8  ;;  %vm611_vm8 = vweird.f32 %v605_v8  ;;  %v615_v24 = vand.u32 2147483647, %v605_v8 }
 0x583   :  { %v647_v7 = vmul.f32 %v2094_v3, %v646_v63  ;;  %v1987_v63 = vld [vmem:[#allocation5 + $0x4] sm:$0xf] }
 0x584   :  { %v618_v26 = vor.u32 1.1754944e-38, %v617_v23  ;;  %vm616_vm11 = vcmp.eq.f32.partialorder %v615_v24, 8.507059e+37 }
 0x585   :  { %v648_v9 = vadd.f32 %v2094_v3, %v647_v7  ;;  %v1778_v7 = vor.u32 %v1988_v5, %v1777_v4 }
 0x587   :  { %v652_v14 = vsel %vm651_vm5, %v2094_v3, %v648_v9  ;;  %v1790_v3 = vor.u32 %v1989_v62, %v1787_v0 }
 0x588   :  { %v657_v16 = vsel %vm654_vm6, %v656_v38, %v652_v14  ;;  %v2098_v17 = vpop.eup %2097  ;;  %v122_v38 = vpop.f32.mrf.mxu0 }
 0x589   :  { %v607_v19 = vmul.f32 %v2098_v17, %v605_v8  ;;  %vm612_vm7 = vweird.f32 %v2098_v17  ;;  %v660_v30 = vmul.f32 %v657_v16, %v2366_v11  ;;  %762 = vmatpush.bf16.msrb.mxu3 %v1790_v3  ;;  %v1782_v8 = vor.u32 %v1987_v63, %v1779_v6 }
 0x58a   :  { %vm613_vm10 = vmor %vm611_vm8, %vm612_vm7 }
 0x58b   :  { %v608_v20 = vsub.f32 1.0, %v607_v19 }
 0x58d   :  { %v609_v21 = vmul.f32 %v2098_v17, %v608_v20  ;;  %763 = vmatpush.bf16.msrb.mxu3 %v1782_v8  ;;  %v1999_v8 = vld [vmem:[#allocation5 + $0x24] sm:$0xf] }
 0x58f   :  { %v610_v22 = vadd.f32 %v2098_v17, %v609_v21 }
 0x591   :  { %v614_v25 = vsel %vm613_vm10, %v2098_v17, %v610_v22 }
 0x592   :  { %v619_v28 = vsel %vm616_vm11, %v618_v26, %v614_v25 }
 0x593   :  { %v622_v34 = vmul.f32 %v619_v28, %v2364_v10  ;;  %v1994_v10 = vld [vmem:[#allocation5 + $0x34] sm:$0xf0] }
 0x594   :  { %v1802_v45 = vor.u32 %v1994_v10, %v1801_v41 }
 0x596   :  { %747 = vmatpush.bf16.msrb.mxu2 %v1802_v45 }
 0x59a   :  { %748 = vmatpush.bf16.msrb.mxu2 %v1794_v56 }
 0x59e   :  { %749 = vmatpush.bf16.msrb.mxu2 %v1786_v2 }
 0x5a2   :  { %750 = vmatpush.bf16.msrb.mxu2 %v1778_v7  ;;  %v2001_v7 = vld [vmem:[#allocation5 + $0x34] sm:$0xf] }
 0x5cf   :  { %v663_v15 = vpop.permute.xlu2 %662 }
 0x5d0   :  { %v665_v18 = vmul.f32 %v663_v15, %v657_v16  ;;  %v123_v15 = vadd.f32 %v122_v38, %v2320_v46 }
 0x5d2   :  { %667 = vrot.lane.b32.xlu1 %v665_v18, %s2240_s2 }
 0x5e6   :  { %v625_v27 = vpop.permute.xlu1 %624 }
 0x5e7   :  { %v627_v29 = vmul.f32 %v625_v27, %v619_v28 }
 0x5e9   :  { %629 = vrot.lane.b32.xlu0 %v627_v29, %s2240_s2 }
 0x644   :  { %v668_v31 = vpop.permute.xlu1 %667 }
 0x645   :  { %v2388_v32 = vadd.f32 %v668_v31, %v660_v30 }
 0x647   :  { %2099 = vtanh.f32 %v2388_v32 }
 0x64d   :  { %v2100_v33 = vpop.eup %2099 }
 0x64e   :  { %673 = vrot.lane.b32.xlu0 %v2100_v33, %s2239_s0 }
 0x65b   :  { %v630_v35 = vpop.permute.xlu0 %629 }
 0x65c   :  { %v2393_v1 = vadd.f32 %v630_v35, %v622_v34 }
 0x65e   :  { %2101 = vtanh.f32 %v2393_v1 }
 0x664   :  { %v2102_v36 = vpop.eup %2101 }
 0x665   :  { %635 = vrot.lane.b32.xlu2 %v2102_v36, %s2239_s0 }
 0x6bf   :  { %v636_v37 = vpop.permute.xlu2 %635 }
 0x6c0   :  { %v674_v11 = vpop.permute.xlu0 %673  ;;  %v638_v39 = vmul.f32 %v636_v37, %v619_v28 }
 0x6c1   :  { %v2397_v40 = vmul.f32 %v674_v11, %v657_v16 }
 0x6c2   :  { %678 = vrot.lane.b32.xlu1 %v638_v39, %s2240_s2 }
 0x6c3   :  { %687 = vrot.lane.b32.xlu2 %v2397_v40, %s2239_s0 }
 0x71d   :  { %v688_v9 = vpop.permute.xlu2 %687 }
 0x734   :  { %v679_v12 = vpop.permute.xlu1 %678 }
 0x735   :  { %681 = vst.msk [vmem:[#allocation3 + $0x10] sm:$0xff] %vm93_vm0, %v679_v12  ;;  %v690_v13 = vsel %vm93_vm0, %v679_v12, %v688_v9  ;;  %v1831_v12 = vld [vmem:[#allocation5 + $0x28] sm:$0xf0] }
 0x736   :  { %v691_v14 = vpack.c.bf16 %v690_v13, %v690_v13  ;;  %v1837_v13 = vld [vmem:[#allocation5 + $0x30] sm:$0xf] }
 0x738   :  { %1807 = vmatmul.msk.bf16.vlgmr.msrb.gmra.mxu2 %vm229_vm9, %v691_v14  ;;  %1808 = vmatmul.msk.bf16.vlgmr.msrb.gmra.mxu3 %vm229_vm9, %v691_v14  ;;  %v2002_v14 = vld [vmem:[#allocation5 + $0x34] sm:$0xf0] }
 0x739   :  { %v1838_v38 = vor.u32 %v2002_v14, %v1837_v13 }
 0x73b   :  { %917 = vmatpush.bf16.msrb.mxu0 %v1838_v38 }
 0x7bb   :  { %v752_v16 = vpop.f32.mrf.mxu2  ;;  %v765_v17 = vpop.f32.mrf.mxu3 }
 0x7bc   :  { %v771_v18 = vadd.f32 %v752_v16, %v123_v15  ;;  %v809_v19 = vadd.f32 %v765_v17, %v2330_v61  ;;  %v1829_v15 = vld [vmem:[#allocation5 + $0x20] sm:$0xf]  ;;  %v1834_v16 = vor.u32 %v1999_v8, %v1831_v12  ;;  %v1997_v17 = vld [vmem:[#allocation5 + $0x14] sm:$0xf] }
 0x7be   :  { %2103 = vtanh.f32 %v771_v18  ;;  %v1809_v24 = vmul.f32 -1.442695, %v771_v18  ;;  %v1810_v25 = vmul.f32 -1.442695, %v809_v19  ;;  %v1823_v18 = vld [vmem:[#allocation5 + $0x18] sm:$0xf0] }
 0x7bf   :  { %2105 = vtanh.f32 %v809_v19 }
 0x7c0   :  { %2107 = vpow2.f32 %v1809_v24  ;;  %v1815_v24 = vld [vmem:[#allocation5 + $0x8] sm:$0xf0] }
 0x7c1   :  { %2109 = vpow2.f32 %v1810_v25 }
 0x7c3   :  { %v754_v20 = vpop.f32.mrf.mxu2  ;;  %v767_v21 = vpop.f32.mrf.mxu3 }
 0x7c4   :  { %v2104_v22 = vpop.eup %2103  ;;  %v1821_v20 = vld [vmem:[#allocation5 + $0x10] sm:$0xf]  ;;  %v1998_v21 = vld [vmem:[#allocation5 + $0x14] sm:$0xf0] }
 0x7c5   :  { %v2106_v23 = vpop.eup %2105  ;;  %794 = vrot.lane.b32.xlu0 %v2104_v22, %s2239_s0  ;;  %v1826_v22 = vor.u32 %v1997_v17, %v1823_v18  ;;  %v1822_v25 = vor.u32 %v1998_v21, %v1821_v20 }
 0x7c6   :  { %832 = vrot.lane.b32.xlu1 %v2106_v23, %s2239_s0  ;;  %v2108_v26 = vpop.eup %2107  ;;  %v1995_v23 = vld [vmem:[#allocation5 + $0x4] sm:$0xf] }
 0x7c7   :  { %v2110_v27 = vpop.eup %2109  ;;  %v775_v28 = vadd.f32 1.0, %v2108_v26  ;;  %v1818_v26 = vor.u32 %v1995_v23, %v1815_v24 }
 0x7c8   :  { %v813_v29 = vadd.f32 1.0, %v2110_v27 }
 0x7c9   :  { %2111 = vrcp.f32 %v775_v28  ;;  %v787_v41 = vand.u32 2147483648, %v775_v28  ;;  %vm781_vm14 = vweird.f32 %v775_v28  ;;  %v785_v43 = vand.u32 2147483647, %v775_v28 }
 0x7ca   :  { %2113 = vrcp.f32 %v813_v29  ;;  %v825_v10 = vand.u32 2147483648, %v813_v29  ;;  %vm819_vm15 = vweird.f32 %v813_v29  ;;  %v823_v45 = vand.u32 2147483647, %v813_v29 }
 0x7cb   :  { %v788_v51 = vor.u32 1.1754944e-38, %v787_v41  ;;  %vm786_vm3 = vcmp.eq.f32.partialorder %v785_v43, 8.507059e+37 }
 0x7cc   :  { %v826_v52 = vor.u32 1.1754944e-38, %v825_v10  ;;  %vm824_vm4 = vcmp.eq.f32.partialorder %v823_v45, 8.507059e+37 }
 0x7cf   :  { %v2112_v61 = vpop.eup %2111 }
 0x7d0   :  { %v2114_v30 = vpop.eup %2113  ;;  %v777_v31 = vmul.f32 %v2112_v61, %v775_v28  ;;  %vm782_vm12 = vweird.f32 %v2112_v61 }
 0x7d1   :  { %v815_v33 = vmul.f32 %v2114_v30, %v813_v29  ;;  %vm820_vm13 = vweird.f32 %v2114_v30  ;;  %vm783_vm1 = vmor %vm781_vm14, %vm782_vm12 }
 0x7d2   :  { %v778_v34 = vsub.f32 1.0, %v777_v31  ;;  %vm821_vm2 = vmor %vm819_vm15, %vm820_vm13  ;;  %v1996_v31 = vld [vmem:[#allocation5 + $0x4] sm:$0xf0] }
 0x7d3   :  { %v816_v35 = vsub.f32 1.0, %v815_v33 }
 0x7d4   :  { %v779_v36 = vmul.f32 %v2112_v61, %v778_v34 }
 0x7d5   :  { %v817_v37 = vmul.f32 %v2114_v30, %v816_v35 }
 0x7d6   :  { %v780_v11 = vadd.f32 %v2112_v61, %v779_v36 }
 0x7d7   :  { %v818_v39 = vadd.f32 %v2114_v30, %v817_v37 }
 0x7d8   :  { %v784_v48 = vsel %vm783_vm1, %v2112_v61, %v780_v11  ;;  %v125_v11 = vpop.f32.mrf.mxu0 }
 0x7d9   :  { %v822_v49 = vsel %vm821_vm2, %v2114_v30, %v818_v39  ;;  %v789_v55 = vsel %vm786_vm3, %v788_v51, %v784_v48  ;;  %v1813_v30 = vld [vmem:[#allocation5] sm:$0xf]  ;;  %v126_v43 = vadd.f32 %v125_v11, %v2320_v46  ;;  %v2010_v11 = vld [vmem:[#allocation5 + $0x34] sm:$0xf0] }
 0x7da   :  { %v827_v57 = vsel %vm824_vm4, %v826_v52, %v822_v49  ;;  %v792_v62 = vmul.f32 %v789_v55, %v2393_v1  ;;  %v1839_v1 = vld [vmem:[#allocation5 + $0x38] sm:$0xf0]  ;;  %v1814_v33 = vor.u32 %v1996_v31, %v1813_v30 }
 0x7db   :  { %v830_v4 = vmul.f32 %v827_v57, %v2388_v32  ;;  %v1842_v9 = vor.u32 %v2001_v7, %v1839_v1  ;;  %v2000_v32 = vld [vmem:[#allocation5 + $0x24] sm:$0xf0] }
 0x7dc   :  { %v1830_v19 = vor.u32 %v2000_v32, %v1829_v15 }
 0x7dd   :  { %930 = vmatpush.bf16.msrb.mxu1 %v1842_v9 }
 0x7de   :  { %918 = vmatpush.bf16.msrb.mxu0 %v1830_v19 }
 0x7e0   :  { %v2431_v39 = vpop.f32.mrf.mxu0 }
 0x7e1   :  { %931 = vmatpush.bf16.msrb.mxu1 %v1834_v16 }
 0x7e2   :  { %919 = vmatpush.bf16.msrb.mxu0 %v1822_v25 }
 0x7e5   :  { %932 = vmatpush.bf16.msrb.mxu1 %v1826_v22 }
 0x7e6   :  { %920 = vmatpush.bf16.msrb.mxu0 %v1814_v33 }
 0x7e8   :  { %v2433_v41 = vpop.f32.mrf.mxu0 }
 0x7e9   :  { %933 = vmatpush.bf16.msrb.mxu1 %v1818_v26 }
 0x7f0   :  { %v2435_v10 = vpop.f32.mrf.mxu0 }
 0x837   :  { %v795_v54 = vpop.permute.xlu0 %794 }
 0x838   :  { %v833_v56 = vpop.permute.xlu1 %832  ;;  %v797_v59 = vmul.f32 %v795_v54, %v789_v55 }
 0x839   :  { %v835_v60 = vmul.f32 %v833_v56, %v827_v57 }
 0x83a   :  { %799 = vrot.lane.b32.xlu2 %v797_v59, %s2240_s2 }
 0x83b   :  { %837 = vrot.lane.b32.xlu0 %v835_v60, %s2240_s2 }
 0x894   :  { %v800_v0 = vpop.permute.xlu2 %799 }
 0x895   :  { %v2413_v2 = vadd.f32 %v800_v0, %v792_v62 }
 0x897   :  { %2115 = vtanh.f32 %v2413_v2 }
 0x89d   :  { %v2116_v3 = vpop.eup %2115 }
 0x89e   :  { %805 = vrot.lane.b32.xlu1 %v2116_v3, %s2239_s0 }
 0x8ad   :  { %v838_v5 = vpop.permute.xlu0 %837 }
 0x8ae   :  { %v2418_v63 = vadd.f32 %v838_v5, %v830_v4 }
 0x8b0   :  { %2117 = vtanh.f32 %v2418_v63 }
 0x8b6   :  { %v2118_v6 = vpop.eup %2117 }
 0x8b7   :  { %843 = vrot.lane.b32.xlu2 %v2118_v6, %s2239_s0 }
 0x910   :  { %v806_v27 = vpop.permute.xlu1 %805 }
 0x911   :  { %v844_v28 = vpop.permute.xlu2 %843  ;;  %v808_v29 = vmul.f32 %v806_v27, %v789_v55 }
 0x912   :  { %v2422_v61 = vmul.f32 %v844_v28, %v827_v57 }
 0x913   :  { %848 = vrot.lane.b32.xlu0 %v808_v29, %s2240_s2 }
 0x914   :  { %857 = vrot.lane.b32.xlu1 %v2422_v61, %s2239_s0 }
 0x985   :  { %v849_v34 = vpop.permute.xlu0 %848 }
 0x986   :  { %851 = vst.msk [vmem:[#allocation3 + $0x18] sm:$0xff] %vm93_vm0, %v849_v34  ;;  %v858_v35 = vpop.permute.xlu1 %857 }
 0x987   :  { %v860_v36 = vsel %vm93_vm0, %v849_v34, %v858_v35 }
 0x988   :  { %v861_v37 = vpack.c.bf16 %v860_v36, %v860_v36 }
 0x98a   :  { %1843 = vmatmul.msk.bf16.vlgmr.msrb.gmra.mxu0 %vm229_vm9, %v861_v37  ;;  %1844 = vmatmul.msk.bf16.vlgmr.msrb.gmra.mxu1 %vm229_vm9, %v861_v37  ;;  %v1873_v37 = vld [vmem:[#allocation5 + $0x30] sm:$0xf] }
 0xa07   :  { %v922_v45 = vpop.f32.mrf.mxu0  ;;  %v935_v48 = vpop.f32.mrf.mxu1 }
 0xa08   :  { %v941_v49 = vadd.f32 %v922_v45, %v126_v43  ;;  %v979_v51 = vadd.f32 %v935_v48, %v2327_v58  ;;  %v2009_v43 = vld [vmem:[#allocation5 + $0x34] sm:$0xf]  ;;  %v1874_v45 = vor.u32 %v2010_v11, %v1873_v37  ;;  %v1875_v48 = vld [vmem:[#allocation5 + $0x38] sm:$0xf0] }
 0xa0a   :  { %2119 = vtanh.f32 %v941_v49  ;;  %v1845_v57 = vmul.f32 -1.442695, %v941_v49  ;;  %v1846_v0 = vmul.f32 -1.442695, %v979_v51  ;;  %v1865_v49 = vld [vmem:[#allocation5 + $0x20] sm:$0xf]  ;;  %1087 = vmatpush.bf16.msra.mxu2 %v1874_v45 }
 0xa0b   :  { %2121 = vtanh.f32 %v979_v51  ;;  %v2008_v51 = vld [vmem:[#allocation5 + $0x24] sm:$0xf0] }
 0xa0c   :  { %2123 = vpow2.f32 %v1845_v57 }
 0xa0f   :  { %v924_v52 = vpop.f32.mrf.mxu0  ;;  %v937_v54 = vpop.f32.mrf.mxu1 }
 0xa10   :  { %v2120_v55 = vpop.eup %2119  ;;  %v1878_v52 = vor.u32 %v2009_v43, %v1875_v48  ;;  %v2007_v54 = vld [vmem:[#allocation5 + $0x24] sm:$0xf] }
 0xa11   :  { %v2122_v56 = vpop.eup %2121  ;;  %964 = vrot.lane.b32.xlu2 %v2120_v55, %s2239_s0  ;;  %v1867_v55 = vld [vmem:[#allocation5 + $0x28] sm:$0xf0] }
 0xa12   :  { %1002 = vrot.lane.b32.xlu0 %v2122_v56, %s2239_s0  ;;  %v2124_v59 = vpop.eup %2123  ;;  %v1866_v56 = vor.u32 %v2008_v51, %v1865_v49  ;;  %1100 = vmatpush.bf16.msra.mxu3 %v1878_v52  ;;  %v1870_v57 = vor.u32 %v2007_v54, %v1867_v55 }
 0xa13   :  { %v945_v60 = vadd.f32 1.0, %v2124_v59  ;;  %v1857_v59 = vld [vmem:[#allocation5 + $0x10] sm:$0xf] }
 0xa14   :  { %1088 = vmatpush.bf16.msra.mxu2 %v1866_v56 }
 0xa15   :  { %2125 = vrcp.f32 %v945_v60  ;;  %v957_v1 = vand.u32 2147483648, %v945_v60  ;;  %vm951_vm6 = vweird.f32 %v945_v60  ;;  %v955_v8 = vand.u32 2147483647, %v945_v60 }
 0xa16   :  { %2127 = vpow2.f32 %v1846_v0  ;;  %v1859_v0 = vld [vmem:[#allocation5 + $0x18] sm:$0xf0]  ;;  %1101 = vmatpush.bf16.msra.mxu3 %v1870_v57 }
 0xa17   :  { %v958_v12 = vor.u32 1.1754944e-38, %v957_v1  ;;  %vm956_vm8 = vcmp.eq.f32.partialorder %v955_v8, 8.507059e+37  ;;  %v1851_v1 = vld [vmem:[#allocation5 + $0x8] sm:$0xf0] }
 0xa1b   :  { %v2126_v62 = vpop.eup %2125 }
 0xa1c   :  { %v947_v3 = vmul.f32 %v2126_v62, %v945_v60  ;;  %v2128_v5 = vpop.eup %2127  ;;  %vm952_vm5 = vweird.f32 %v2126_v62  ;;  %v2006_v60 = vld [vmem:[#allocation5 + $0x14] sm:$0xf0] }
 0xa1d   :  { %v983_v6 = vadd.f32 1.0, %v2128_v5  ;;  %vm953_vm7 = vmor %vm951_vm6, %vm952_vm5  ;;  %v2004_v5 = vld [vmem:[#allocation5 + $0x4] sm:$0xf0] }
 0xa1e   :  { %v948_v58 = vsub.f32 1.0, %v947_v3  ;;  %v1858_v3 = vor.u32 %v2006_v60, %v1857_v59 }
 0xa1f   :  { %2129 = vrcp.f32 %v983_v6  ;;  %v995_v19 = vand.u32 2147483648, %v983_v6  ;;  %vm989_vm11 = vweird.f32 %v983_v6  ;;  %v993_v20 = vand.u32 2147483647, %v983_v6 }
 0xa20   :  { %v949_v4 = vmul.f32 %v2126_v62, %v948_v58  ;;  %1089 = vmatpush.bf16.msra.mxu2 %v1858_v3 }
 0xa21   :  { %v996_v22 = vor.u32 1.1754944e-38, %v995_v19  ;;  %vm994_vm13 = vcmp.eq.f32.partialorder %v993_v20, 8.507059e+37 }
 0xa22   :  { %v950_v7 = vadd.f32 %v2126_v62, %v949_v4  ;;  %v1849_v4 = vld [vmem:[#allocation5] sm:$0xf] }
 0xa24   :  { %v954_v9 = vsel %vm953_vm7, %v2126_v62, %v950_v7  ;;  %v2005_v62 = vld [vmem:[#allocation5 + $0x14] sm:$0xf]  ;;  %v2003_v7 = vld [vmem:[#allocation5 + $0x4] sm:$0xf] }
 0xa25   :  { %v959_v14 = vsel %vm956_vm8, %v958_v12, %v954_v9  ;;  %v2130_v15 = vpop.eup %2129  ;;  %v1862_v58 = vor.u32 %v2005_v62, %v1859_v0  ;;  %v1854_v8 = vor.u32 %v2003_v7, %v1851_v1 }
 0xa26   :  { %v985_v16 = vmul.f32 %v2130_v15, %v983_v6  ;;  %vm990_vm10 = vweird.f32 %v2130_v15  ;;  %v962_v26 = vmul.f32 %v959_v14, %v2413_v2  ;;  %v1850_v6 = vor.u32 %v2004_v5, %v1849_v4 }
 0xa27   :  { %vm991_vm12 = vmor %vm989_vm11, %vm990_vm10  ;;  %1102 = vmatpush.bf16.msra.mxu3 %v1862_v58 }
 0xa28   :  { %v986_v32 = vsub.f32 1.0, %v985_v16  ;;  %1090 = vmatpush.bf16.msra.mxu2 %v1850_v6 }
 0xa2a   :  { %v987_v17 = vmul.f32 %v2130_v15, %v986_v32 }
 0xa2b   :  { %1103 = vmatpush.bf16.msra.mxu3 %v1854_v8 }
 0xa2c   :  { %v988_v18 = vadd.f32 %v2130_v15, %v987_v17 }
 0xa2e   :  { %v992_v21 = vsel %vm991_vm12, %v2130_v15, %v988_v18 }
 0xa2f   :  { %v997_v24 = vsel %vm994_vm13, %v996_v22, %v992_v21 }
 0xa30   :  { %v1000_v27 = vmul.f32 %v997_v24, %v2418_v63 }
 0xa6b   :  { %v965_v13 = vpop.permute.xlu2 %964 }
 0xa6c   :  { %v967_v38 = vmul.f32 %v965_v13, %v959_v14 }
 0xa6e   :  { %969 = vrot.lane.b32.xlu1 %v967_v38, %s2240_s2  ;;  %v128_v38 = vadd.f32 %v2431_v39, %v2320_v46 }
 0xa84   :  { %v1003_v23 = vpop.permute.xlu0 %1002 }
 0xa85   :  { %v1005_v25 = vmul.f32 %v1003_v23, %v997_v24 }
 0xa87   :  { %1007 = vrot.lane.b32.xlu2 %v1005_v25, %s2240_s2 }
 0xae0   :  { %v970_v28 = vpop.permute.xlu1 %969 }
 0xae1   :  { %v1008_v29 = vpop.permute.xlu2 %1007  ;;  %v2445_v30 = vadd.f32 %v970_v28, %v962_v26 }
 0xae2   :  { %v2447_v31 = vadd.f32 %v1008_v29, %v1000_v27 }
 0xae3   :  { %2131 = vtanh.f32 %v2445_v30 }
 0xae4   :  { %2133 = vtanh.f32 %v2447_v31 }
 0xae9   :  { %v2132_v33 = vpop.eup %2131 }
 0xaea   :  { %v2134_v34 = vpop.eup %2133  ;;  %975 = vrot.lane.b32.xlu0 %v2132_v33, %s2239_s0 }
 0xaeb   :  { %1013 = vrot.lane.b32.xlu1 %v2134_v34, %s2239_s0 }
 0xb5c   :  { %v976_v35 = vpop.permute.xlu0 %975 }
 0xb5d   :  { %v1014_v2 = vpop.permute.xlu1 %1013  ;;  %v978_v36 = vmul.f32 %v976_v35, %v959_v14 }
 0xb5e   :  { %v2453_v63 = vmul.f32 %v1014_v2, %v997_v24 }
 0xb5f   :  { %1018 = vrot.lane.b32.xlu2 %v978_v36, %s2240_s2 }
 0xb60   :  { %1027 = vrot.lane.b32.xlu0 %v2453_v63, %s2239_s0 }
 0xbb9   :  { %v1019_v9 = vpop.permute.xlu2 %1018 }
 0xbba   :  { %1021 = vst.msk [vmem:[#allocation3 + $0x20] sm:$0xff] %vm93_vm0, %v1019_v9 }
 0xbd2   :  { %v1028_v12 = vpop.permute.xlu0 %1027 }
 0xbd3   :  { %v1030_v13 = vsel %vm93_vm0, %v1019_v9, %v1028_v12 }
 0xbd4   :  { %v1031_v14 = vpack.c.bf16 %v1030_v13, %v1030_v13  ;;  %v1909_v13 = vld [vmem:[#allocation5 + $0x30] sm:$0xf] }
 0xbd6   :  { %1879 = vmatmul.msk.bf16.vlgmr.msra.gmra.mxu2 %vm229_vm9, %v1031_v14  ;;  %1880 = vmatmul.msk.bf16.vlgmr.msra.gmra.mxu3 %vm229_vm9, %v1031_v14  ;;  %v2017_v14 = vld [vmem:[#allocation5 + $0x34] sm:$0xf] }
 0xc59   :  { %v1092_v15 = vpop.f32.mrf.mxu2  ;;  %v1105_v16 = vpop.f32.mrf.mxu3 }
 0xc5a   :  { %v1111_v32 = vadd.f32 %v1092_v15, %v128_v38  ;;  %v1149_v17 = vadd.f32 %v1105_v16, %v2325_v53  ;;  %v1911_v15 = vld [vmem:[#allocation5 + $0x38] sm:$0xf0]  ;;  %v1901_v16 = vld [vmem:[#allocation5 + $0x20] sm:$0xf] }
 0xc5c   :  { %2135 = vtanh.f32 %v1111_v32  ;;  %v1882_v22 = vmul.f32 -1.442695, %v1149_v17  ;;  %v1881_v25 = vmul.f32 -1.442695, %v1111_v32  ;;  %v2016_v32 = vld [vmem:[#allocation5 + $0x24] sm:$0xf0] }
 0xc5d   :  { %2137 = vtanh.f32 %v1149_v17  ;;  %v1914_v17 = vor.u32 %v2017_v14, %v1911_v15 }
 0xc5e   :  { %2139 = vpow2.f32 %v1882_v22  ;;  %v1893_v22 = vld [vmem:[#allocation5 + $0x10] sm:$0xf] }
 0xc5f   :  { %1270 = vmatpush.bf16.msra.mxu1 %v1914_v17 }
 0xc61   :  { %v1094_v18 = vpop.f32.mrf.mxu2  ;;  %v1107_v19 = vpop.f32.mrf.mxu3 }
 0xc62   :  { %v2136_v20 = vpop.eup %2135  ;;  %v2015_v18 = vld [vmem:[#allocation5 + $0x24] sm:$0xf]  ;;  %v1903_v19 = vld [vmem:[#allocation5 + $0x28] sm:$0xf0] }
 0xc63   :  { %v2138_v21 = vpop.eup %2137  ;;  %1134 = vrot.lane.b32.xlu1 %v2136_v20, %s2239_s0  ;;  %v1902_v20 = vor.u32 %v2016_v32, %v1901_v16 }
 0xc64   :  { %1172 = vrot.lane.b32.xlu2 %v2138_v21, %s2239_s0  ;;  %v2140_v23 = vpop.eup %2139  ;;  %v1906_v21 = vor.u32 %v2015_v18, %v1903_v19 }
 0xc65   :  { %v1153_v24 = vadd.f32 1.0, %v2140_v23  ;;  %v2014_v23 = vld [vmem:[#allocation5 + $0x14] sm:$0xf0] }
 0xc66   :  { %1271 = vmatpush.bf16.msra.mxu1 %v1906_v21 }
 0xc67   :  { %2141 = vrcp.f32 %v1153_v24  ;;  %v1165_v34 = vand.u32 2147483648, %v1153_v24  ;;  %vm1159_vm15 = vweird.f32 %v1153_v24  ;;  %v1163_v35 = vand.u32 2147483647, %v1153_v24 }
 0xc68   :  { %2143 = vpow2.f32 %v1881_v25  ;;  %v1894_v25 = vor.u32 %v2014_v23, %v1893_v22 }
 0xc69   :  { %v1166_v36 = vor.u32 1.1754944e-38, %v1165_v34  ;;  %vm1164_vm2 = vcmp.eq.f32.partialorder %v1163_v35, 8.507059e+37 }
 0xc6d   :  { %v2142_v39 = vpop.eup %2141 }
 0xc6e   :  { %v1155_v26 = vmul.f32 %v2142_v39, %v1153_v24  ;;  %v2144_v27 = vpop.eup %2143  ;;  %vm1160_vm14 = vweird.f32 %v2142_v39  ;;  %v2013_v24 = vld [vmem:[#allocation5 + $0x14] sm:$0xf] }
 0xc6f   :  { %v1115_v29 = vadd.f32 1.0, %v2144_v27  ;;  %vm1161_vm1 = vmor %vm1159_vm15, %vm1160_vm14  ;;  %v2012_v27 = vld [vmem:[#allocation5 + $0x4] sm:$0xf0] }
 0xc70   :  { %v1156_v53 = vsub.f32 1.0, %v1155_v26 }
 0xc71   :  { %2145 = vrcp.f32 %v1115_v29  ;;  %v1127_v54 = vand.u32 2147483648, %v1115_v29  ;;  %vm1121_vm4 = vweird.f32 %v1115_v29  ;;  %v1125_v55 = vand.u32 2147483647, %v1115_v29 }
 0xc72   :  { %v1157_v28 = vmul.f32 %v2142_v39, %v1156_v53  ;;  %v1885_v53 = vld [vmem:[#allocation5] sm:$0xf] }
 0xc73   :  { %v1128_v57 = vor.u32 1.1754944e-38, %v1127_v54  ;;  %vm1126_vm6 = vcmp.eq.f32.partialorder %v1125_v55, 8.507059e+37 }
 0xc74   :  { %v1158_v33 = vadd.f32 %v2142_v39, %v1157_v28  ;;  %v2011_v28 = vld [vmem:[#allocation5 + $0x4] sm:$0xf] }
 0xc76   :  { %v1162_v2 = vsel %vm1161_vm1, %v2142_v39, %v1158_v33  ;;  %v1895_v39 = vld [vmem:[#allocation5 + $0x18] sm:$0xf0]  ;;  %v1886_v33 = vor.u32 %v2012_v27, %v1885_v53 }
 0xc77   :  { %v1167_v11 = vsel %vm1164_vm2, %v1166_v36, %v1162_v2  ;;  %v2146_v43 = vpop.eup %2145  ;;  %v1898_v26 = vor.u32 %v2013_v24, %v1895_v39 }
 0xc78   :  { %v1117_v48 = vmul.f32 %v2146_v43, %v1115_v29  ;;  %vm1122_vm3 = vweird.f32 %v2146_v43  ;;  %v1170_v0 = vmul.f32 %v1167_v11, %v2447_v31  ;;  %v1887_v29 = vld [vmem:[#allocation5 + $0x8] sm:$0xf0] }
 0xc79   :  { %vm1123_vm5 = vmor %vm1121_vm4, %vm1122_vm3  ;;  %1272 = vmatpush.bf16.msra.mxu1 %v1898_v26  ;;  %v1890_v34 = vor.u32 %v2011_v28, %v1887_v29 }
 0xc7a   :  { %v1118_v49 = vsub.f32 1.0, %v1117_v48 }
 0xc7c   :  { %v1119_v51 = vmul.f32 %v2146_v43, %v1118_v49 }
 0xc7d   :  { %1273 = vmatpush.bf16.msra.mxu1 %v1890_v34  ;;  %v1945_v34 = vld [vmem:[#allocation5 + $0x30] sm:$0xf] }
 0xc7e   :  { %v1120_v52 = vadd.f32 %v2146_v43, %v1119_v51 }
 0xc80   :  { %v1124_v56 = vsel %vm1123_vm5, %v2146_v43, %v1120_v52 }
 0xc81   :  { %v1129_v60 = vsel %vm1126_vm6, %v1128_v57, %v1124_v56 }
 0xc82   :  { %v1132_v5 = vmul.f32 %v1129_v60, %v2445_v30  ;;  %v2018_v30 = vld [vmem:[#allocation5 + $0x34] sm:$0xf0] }
 0xc83   :  { %v1910_v38 = vor.u32 %v2018_v30, %v1909_v13 }
 0xc85   :  { %1257 = vmatpush.bf16.msra.mxu0 %v1910_v38 }
 0xc89   :  { %1258 = vmatpush.bf16.msra.mxu0 %v1902_v20 }
 0xc8d   :  { %1259 = vmatpush.bf16.msra.mxu0 %v1894_v25 }
 0xc91   :  { %1260 = vmatpush.bf16.msra.mxu0 %v1886_v33  ;;  %v2025_v33 = vld [vmem:[#allocation5 + $0x34] sm:$0xf] }
 0xcbe   :  { %v1173_v37 = vpop.permute.xlu2 %1172 }
 0xcbf   :  { %v1175_v45 = vmul.f32 %v1173_v37, %v1167_v11 }
 0xcc1   :  { %1177 = vrot.lane.b32.xlu1 %v1175_v45, %s2240_s2 }
 0xcd5   :  { %v1135_v59 = vpop.permute.xlu1 %1134 }
 0xcd6   :  { %v1137_v62 = vmul.f32 %v1135_v59, %v1129_v60 }
 0xcd8   :  { %1139 = vrot.lane.b32.xlu0 %v1137_v62, %s2240_s2 }
 0xd33   :  { %v1178_v3 = vpop.permute.xlu1 %1177 }
 0xd34   :  { %v2470_v58 = vadd.f32 %v1178_v3, %v1170_v0 }
 0xd36   :  { %2147 = vtanh.f32 %v2470_v58 }
 0xd3c   :  { %v2148_v4 = vpop.eup %2147 }
 0xd3d   :  { %1183 = vrot.lane.b32.xlu0 %v2148_v4, %s2239_s0 }
 0xd4a   :  { %v1140_v6 = vpop.permute.xlu0 %1139 }
 0xd4b   :  { %v2475_v7 = vadd.f32 %v1140_v6, %v1132_v5 }
 0xd4d   :  { %2149 = vtanh.f32 %v2475_v7 }
 0xd53   :  { %v2150_v1 = vpop.eup %2149 }
 0xd54   :  { %1145 = vrot.lane.b32.xlu2 %v2150_v1, %s2239_s0 }
 0xdae   :  { %v1146_v8 = vpop.permute.xlu2 %1145 }
 0xdaf   :  { %v1184_v31 = vpop.permute.xlu0 %1183  ;;  %v1148_v9 = vmul.f32 %v1146_v8, %v1129_v60 }
 0xdb0   :  { %v2479_v12 = vmul.f32 %v1184_v31, %v1167_v11  ;;  %v131_v11 = vadd.f32 %v2433_v41, %v2320_v46 }
 0xdb1   :  { %1188 = vrot.lane.b32.xlu1 %v1148_v9, %s2240_s2 }
 0xdb2   :  { %1197 = vrot.lane.b32.xlu2 %v2479_v12, %s2239_s0 }
 0xe0c   :  { %v1198_v35 = vpop.permute.xlu2 %1197 }
 0xe23   :  { %v1189_v2 = vpop.permute.xlu1 %1188 }
 0xe24   :  { %1191 = vst.msk [vmem:[#allocation3 + $0x28] sm:$0xff] %vm93_vm0, %v1189_v2  ;;  %v1200_v36 = vsel %vm93_vm0, %v1189_v2, %v1198_v35  ;;  %v2026_v2 = vld [vmem:[#allocation5 + $0x34] sm:$0xf0] }
 0xe25   :  { %v1201_v37 = vpack.c.bf16 %v1200_v36, %v1200_v36  ;;  %v2023_v36 = vld [vmem:[#allocation5 + $0x24] sm:$0xf] }
 0xe27   :  { %1915 = vmatmul.msk.bf16.vlgmr.msra.gmra.mxu0 %vm229_vm9, %v1201_v37  ;;  %1916 = vmatmul.msk.bf16.vlgmr.msra.gmra.mxu1 %vm229_vm9, %v1201_v37  ;;  %v1939_v37 = vld [vmem:[#allocation5 + $0x28] sm:$0xf0] }
 0xea4   :  { %v1262_v43 = vpop.f32.mrf.mxu0  ;;  %v1275_v45 = vpop.f32.mrf.mxu1 }
 0xea5   :  { %v1281_v48 = vadd.f32 %v1262_v43, %v131_v11  ;;  %v1319_v49 = vadd.f32 %v1275_v45, %v2322_v47  ;;  %v1946_v11 = vor.u32 %v2026_v2, %v1945_v34  ;;  %v1937_v43 = vld [vmem:[#allocation5 + $0x20] sm:$0xf]  ;;  %v2024_v45 = vld [vmem:[#allocation5 + $0x24] sm:$0xf0] }
 0xea7   :  { %2151 = vtanh.f32 %v1281_v48  ;;  %v1917_v56 = vmul.f32 -1.442695, %v1281_v48  ;;  %v1918_v57 = vmul.f32 -1.442695, %v1319_v49  ;;  %1427 = vmatpush.bf16.msrb.mxu2 %v1946_v11  ;;  %v1938_v48 = vor.u32 %v2024_v45, %v1937_v43 }
 0xea8   :  { %2153 = vtanh.f32 %v1319_v49  ;;  %v2021_v49 = vld [vmem:[#allocation5 + $0x14] sm:$0xf] }
 0xea9   :  { %2155 = vpow2.f32 %v1917_v56 }
 0xeaa   :  { %2157 = vpow2.f32 %v1918_v57  ;;  %v2019_v57 = vld [vmem:[#allocation5 + $0x4] sm:$0xf] }
 0xeab   :  { %1428 = vmatpush.bf16.msrb.mxu2 %v1938_v48 }
 0xeac   :  { %v1264_v51 = vpop.f32.mrf.mxu0  ;;  %v1277_v52 = vpop.f32.mrf.mxu1 }
 0xead   :  { %v2152_v54 = vpop.eup %2151  ;;  %v1931_v51 = vld [vmem:[#allocation5 + $0x18] sm:$0xf0]  ;;  %v1929_v52 = vld [vmem:[#allocation5 + $0x10] sm:$0xf] }
 0xeae   :  { %v2154_v55 = vpop.eup %2153  ;;  %1304 = vrot.lane.b32.xlu0 %v2152_v54, %s2239_s0  ;;  %v2022_v54 = vld [vmem:[#allocation5 + $0x14] sm:$0xf0] }
 0xeaf   :  { %1342 = vrot.lane.b32.xlu1 %v2154_v55, %s2239_s0  ;;  %v2156_v41 = vpop.eup %2155  ;;  %v1934_v55 = vor.u32 %v2021_v49, %v1931_v51  ;;  %v1930_v56 = vor.u32 %v2022_v54, %v1929_v52 }
 0xeb0   :  { %v2158_v59 = vpop.eup %2157  ;;  %v1285_v60 = vadd.f32 1.0, %v2156_v41  ;;  %v1923_v41 = vld [vmem:[#allocation5 + $0x8] sm:$0xf0] }
 0xeb1   :  { %v1323_v62 = vadd.f32 1.0, %v2158_v59  ;;  %v1926_v59 = vor.u32 %v2019_v57, %v1923_v41  ;;  %1429 = vmatpush.bf16.msrb.mxu2 %v1930_v56 }
 0xeb2   :  { %2159 = vrcp.f32 %v1285_v60  ;;  %v1297_v13 = vand.u32 2147483648, %v1285_v60  ;;  %vm1291_vm10 = vweird.f32 %v1285_v60  ;;  %v1295_v14 = vand.u32 2147483647, %v1285_v60 }
 0xeb3   :  { %2161 = vrcp.f32 %v1323_v62  ;;  %v1335_v30 = vand.u32 2147483648, %v1323_v62  ;;  %vm1329_vm11 = vweird.f32 %v1323_v62  ;;  %v1333_v38 = vand.u32 2147483647, %v1323_v62 }
 0xeb4   :  { %v1298_v32 = vor.u32 1.1754944e-38, %v1297_v13  ;;  %vm1296_vm14 = vcmp.eq.f32.partialorder %v1295_v14, 8.507059e+37 }
 0xeb5   :  { %v1336_v17 = vor.u32 1.1754944e-38, %v1335_v30  ;;  %vm1334_vm15 = vcmp.eq.f32.partialorder %v1333_v38, 8.507059e+37 }
 0xeb8   :  { %v2160_v47 = vpop.eup %2159 }
 0xeb9   :  { %v2162_v0 = vpop.eup %2161  ;;  %v1287_v3 = vmul.f32 %v2160_v47, %v1285_v60  ;;  %vm1292_vm7 = vweird.f32 %v2160_v47 }
 0xeba   :  { %v1325_v4 = vmul.f32 %v2162_v0, %v1323_v62  ;;  %vm1330_vm8 = vweird.f32 %v2162_v0  ;;  %vm1293_vm12 = vmor %vm1291_vm10, %vm1292_vm7 }
 0xebb   :  { %v1288_v5 = vsub.f32 1.0, %v1287_v3  ;;  %vm1331_vm13 = vmor %vm1329_vm11, %vm1330_vm8  ;;  %v1921_v3 = vld [vmem:[#allocation5] sm:$0xf]  ;;  %vm1601_vm8 = vcmask 519168  }
 0xebc   :  { %v1326_v6 = vsub.f32 1.0, %v1325_v4  ;;  %v2020_v4 = vld [vmem:[#allocation5 + $0x4] sm:$0xf0] }
 0xebd   :  { %v1289_v1 = vmul.f32 %v2160_v47, %v1288_v5  ;;  %v1922_v5 = vor.u32 %v2020_v4, %v1921_v3 }
 0xebe   :  { %v1327_v8 = vmul.f32 %v2162_v0, %v1326_v6 }
 0xebf   :  { %v1290_v31 = vadd.f32 %v2160_v47, %v1289_v1  ;;  %1430 = vmatpush.bf16.msrb.mxu2 %v1922_v5 }
 0xec0   :  { %v1328_v9 = vadd.f32 %v2162_v0, %v1327_v8 }
 0xec1   :  { %v1294_v15 = vsel %vm1293_vm12, %v2160_v47, %v1290_v31 }
 0xec2   :  { %v1332_v16 = vsel %vm1331_vm13, %v2162_v0, %v1328_v9  ;;  %v1299_v19 = vsel %vm1296_vm14, %v1298_v32, %v1294_v15  ;;  %v133_v9 = vadd.f32 %v2435_v10, %v2320_v46 }
 0xec3   :  { %v1337_v21 = vsel %vm1334_vm15, %v1336_v17, %v1332_v16  ;;  %v1302_v24 = vmul.f32 %v1299_v19, %v2475_v7  ;;  %v1947_v7 = vld [vmem:[#allocation5 + $0x38] sm:$0xf0] }
 0xec4   :  { %v1340_v53 = vmul.f32 %v1337_v21, %v2470_v58  ;;  %v1950_v35 = vor.u32 %v2025_v33, %v1947_v7  ;;  %v1942_v58 = vor.u32 %v2023_v36, %v1939_v37 }
 0xec6   :  { %1440 = vmatpush.bf16.msrb.mxu3 %v1950_v35 }
 0xeca   :  { %1441 = vmatpush.bf16.msrb.mxu3 %v1942_v58 }
 0xece   :  { %1442 = vmatpush.bf16.msrb.mxu3 %v1934_v55 }
 0xed2   :  { %1443 = vmatpush.bf16.msrb.mxu3 %v1926_v59 }
 0xf20   :  { %v1305_v18 = vpop.permute.xlu0 %1304 }
 0xf21   :  { %v1343_v20 = vpop.permute.xlu1 %1342  ;;  %v1307_v22 = vmul.f32 %v1305_v18, %v1299_v19 }
 0xf22   :  { %v1345_v23 = vmul.f32 %v1343_v20, %v1337_v21 }
 0xf23   :  { %1309 = vrot.lane.b32.xlu2 %v1307_v22, %s2240_s2 }
 0xf24   :  { %1347 = vrot.lane.b32.xlu0 %v1345_v23, %s2240_s2 }
 0xf7d   :  { %v1310_v39 = vpop.permute.xlu2 %1309 }
 0xf7e   :  { %v2496_v25 = vadd.f32 %v1310_v39, %v1302_v24 }
 0xf80   :  { %2163 = vtanh.f32 %v2496_v25 }
 0xf86   :  { %v2164_v26 = vpop.eup %2163 }
 0xf87   :  { %1315 = vrot.lane.b32.xlu1 %v2164_v26, %s2239_s0 }
 0xf96   :  { %v1348_v27 = vpop.permute.xlu0 %1347 }
 0xf97   :  { %v2501_v28 = vadd.f32 %v1348_v27, %v1340_v53 }
 0xf99   :  { %2165 = vtanh.f32 %v2501_v28 }
 0xf9f   :  { %v2166_v29 = vpop.eup %2165 }
 0xfa0   :  { %1353 = vrot.lane.b32.xlu2 %v2166_v29, %s2239_s0 }
 0xff9   :  { %v1316_v60 = vpop.permute.xlu1 %1315 }
 0xffa   :  { %v1354_v62 = vpop.permute.xlu2 %1353  ;;  %v1318_v47 = vmul.f32 %v1316_v60, %v1299_v19 }
 0xffb   :  { %v2505_v0 = vmul.f32 %v1354_v62, %v1337_v21 }
 0xffc   :  { %1358 = vrot.lane.b32.xlu0 %v1318_v47, %s2240_s2 }
 0xffd   :  { %1367 = vrot.lane.b32.xlu1 %v2505_v0, %s2239_s0 }
0x106e   :  { %v1359_v6 = vpop.permute.xlu0 %1358 }
0x106f   :  { %1361 = vst.msk [vmem:[#allocation3 + $0x30] sm:$0xff] %vm93_vm0, %v1359_v6  ;;  %v1368_v1 = vpop.permute.xlu1 %1367 }
0x1070   :  { %v1370_v8 = vsel %vm93_vm0, %v1359_v6, %v1368_v1 }
0x1071   :  { %v1371_v31 = vpack.c.bf16 %v1370_v8, %v1370_v8 }
0x1073   :  { %1951 = vmatmul.msk.bf16.vlgmr.msrb.gmra.mxu2 %vm229_vm9, %v1371_v31  ;;  %1952 = vmatmul.msk.bf16.vlgmr.msrb.gmra.mxu3 %vm229_vm9, %v1371_v31 }
0x10f6   :  { %v1432_v13 = vpop.f32.mrf.mxu2  ;;  %v1445_v30 = vpop.f32.mrf.mxu3 }
0x10f7   :  { %v1451_v14 = vadd.f32 %v1432_v13, %v133_v9  ;;  %v1489_v38 = vadd.f32 %v1445_v30, %v2318_v44 }
0x10f9   :  { %2167 = vtanh.f32 %v1451_v14  ;;  %v1954_v18 = vmul.f32 -1.442695, %v1489_v38  ;;  %v1953_v10 = vmul.f32 -1.442695, %v1451_v14 }
0x10fa   :  { %2169 = vtanh.f32 %v1489_v38 }
0x10fb   :  { %2171 = vpow2.f32 %v1954_v18 }
0x10fe   :  { %v1434_v15 = vpop.f32.mrf.mxu2  ;;  %v1447_v16 = vpop.f32.mrf.mxu3 }
0x10ff   :  { %v2168_v32 = vpop.eup %2167 }
0x1100   :  { %v2170_v17 = vpop.eup %2169  ;;  %1474 = vrot.lane.b32.xlu0 %v2168_v32, %s2239_s0  ;;  %v1541_v32 = vld [vmem:[#allocation3 + $0x20] sm:$0xff] }
0x1101   :  { %1512 = vrot.lane.b32.xlu2 %v2170_v17, %s2239_s0  ;;  %v2172_v19 = vpop.eup %2171  ;;  %v1542_v17 = vld [vmem:[#allocation3 + $0x28] sm:$0xff] }
0x1102   :  { %v1493_v20 = vadd.f32 1.0, %v2172_v19 }
0x1104   :  { %2173 = vrcp.f32 %v1493_v20  ;;  %v1505_v26 = vand.u32 2147483648, %v1493_v20  ;;  %vm1499_vm1 = vweird.f32 %v1493_v20  ;;  %v1503_v53 = vand.u32 2147483647, %v1493_v20 }
0x1105   :  { %2175 = vpow2.f32 %v1953_v10 }
0x1106   :  { %v1506_v29 = vor.u32 1.1754944e-38, %v1505_v26  ;;  %vm1504_vm3 = vcmp.eq.f32.partialorder %v1503_v53, 8.507059e+37  ;;  %v1539_v26 = vld [vmem:[#allocation3 + $0x10] sm:$0xff]  ;;  %v1540_v53 = vld [vmem:[#allocation3 + $0x18] sm:$0xff] }
0x110a   :  { %v2174_v46 = vpop.eup %2173 }
0x110b   :  { %v1495_v21 = vmul.f32 %v2174_v46, %v1493_v20  ;;  %v2176_v22 = vpop.eup %2175  ;;  %vm1500_vm9 = vweird.f32 %v2174_v46 }
0x110c   :  { %v1455_v24 = vadd.f32 1.0, %v2176_v22  ;;  %vm1501_vm2 = vmor %vm1499_vm1, %vm1500_vm9 }
0x110d   :  { %v1496_v44 = vsub.f32 1.0, %v1495_v21 }
0x110e   :  { %2177 = vrcp.f32 %v1455_v24  ;;  %v1467_v43 = vand.u32 2147483648, %v1455_v24  ;;  %vm1461_vm5 = vweird.f32 %v1455_v24  ;;  %v1465_v45 = vand.u32 2147483647, %v1455_v24 }
0x110f   :  { %v1497_v23 = vmul.f32 %v2174_v46, %v1496_v44 }
0x1110   :  { %v1468_v48 = vor.u32 1.1754944e-38, %v1467_v43  ;;  %vm1466_vm7 = vcmp.eq.f32.partialorder %v1465_v45, 8.507059e+37 }
0x1111   :  { %v1498_v39 = vadd.f32 %v2174_v46, %v1497_v23 }
0x1113   :  { %v1502_v27 = vsel %vm1501_vm2, %v2174_v46, %v1498_v39 }
0x1114   :  { %v1507_v7 = vsel %vm1504_vm3, %v1506_v29, %v1502_v27  ;;  %v2178_v34 = vpop.eup %2177 }
0x1115   :  { %v1457_v2 = vmul.f32 %v2178_v34, %v1455_v24  ;;  %vm1462_vm4 = vweird.f32 %v2178_v34  ;;  %v1510_v54 = vmul.f32 %v1507_v7, %v2501_v28 }
0x1116   :  { %vm1463_vm6 = vmor %vm1461_vm5, %vm1462_vm4 }
0x1117   :  { %v1458_v36 = vsub.f32 1.0, %v1457_v2 }
0x1119   :  { %v1459_v37 = vmul.f32 %v2178_v34, %v1458_v36  ;;  %v1537_v36 = vld [vmem:[#allocation3] sm:$0xff] }
0x111b   :  { %v1460_v11 = vadd.f32 %v2178_v34, %v1459_v37  ;;  %v1538_v37 = vld [vmem:[#allocation3 + $0x8] sm:$0xff] }
0x111d   :  { %v1464_v58 = vsel %vm1463_vm6, %v2178_v34, %v1460_v11 }
0x111e   :  { %v1469_v51 = vsel %vm1466_vm7, %v1468_v48, %v1464_v58 }
0x115b   :  { %v1513_v33 = vpop.permute.xlu2 %1512 }
0x115c   :  { %v1515_v35 = vmul.f32 %v1513_v33, %v1507_v7 }
0x115e   :  { %1517 = vrot.lane.b32.xlu1 %v1515_v35, %s2240_s2 }
0x1166   :  { %683 = vrot.lane.b32.xlu1 %v2397_v40, %s2240_s2  ;;  %v1472_v40 = vmul.f32 %v1469_v51, %v2496_v25 }
0x1172   :  { %v1475_v49 = vpop.permute.xlu0 %1474 }
0x1173   :  { %v1477_v52 = vmul.f32 %v1475_v49, %v1469_v51 }
0x1175   :  { %1479 = vrot.lane.b32.xlu2 %v1477_v52, %s2240_s2  ;;  %v1543_v52 = vld [vmem:[#allocation3 + $0x30] sm:$0xff] }
0x117d   :  { %343 = vrot.lane.b32.xlu2 %v2348_v50, %s2240_s2 }
0x1185   :  { %853 = vrot.lane.b32.xlu2 %v2422_v61, %s2240_s2 }
0x118d   :  { %1363 = vrot.lane.b32.xlu2 %v2505_v0, %s2240_s2 }
0x11cf   :  { %v1480_v55 = vpop.permute.xlu2 %1479 }
0x11d0   :  { %v1518_v56 = vpop.permute.xlu1 %1517  ;;  %v1482_v57 = vadd.f32 %v1480_v55, %v1472_v40 }
0x11d1   :  { %v1520_v41 = vadd.f32 %v1518_v56, %v1510_v54 }
0x11d2   :  { %2179 = vtanh.f32 %v1482_v57 }
0x11d3   :  { %2181 = vtanh.f32 %v1520_v41 }
0x11d7   :  { %v344_v59 = vpop.permute.xlu2 %343 }
0x11d8   :  { %v2180_v60 = vpop.eup %2179  ;;  %v684_v62 = vpop.permute.xlu1 %683  ;;  %346 = vst.msk [vmem:[#allocation4 + $0x38] sm:$0xff] %vm93_vm0, %v344_v59 }
0x11d9   :  { %v2182_v50 = vpop.eup %2181  ;;  %686 = vst.msk [vmem:[#allocation4 + $0x28] sm:$0xff] %vm93_vm0, %v684_v62  ;;  %1485 = vrot.lane.b32.xlu1 %v2180_v60, %s2239_s0 }
0x11da   :  { %1523 = vrot.lane.b32.xlu0 %v2182_v50, %s2239_s0 }
0x11df   :  { %v854_v61 = vpop.permute.xlu2 %853  ;;  %v1552_v44 = vld [vmem:[#allocation4 + $0x38] sm:$0xff] }
0x11e0   :  { %856 = vst.msk [vmem:[#allocation4 + $0x20] sm:$0xff] %vm93_vm0, %v854_v61 }
0x11e1   :  { %1193 = vrot.lane.b32.xlu1 %v2479_v12, %s2240_s2  ;;  %v1550_v12 = vld [vmem:[#allocation4 + $0x28] sm:$0xff] }
0x11e2   :  { %513 = vrot.lane.b32.xlu0 %v2372_v42, %s2240_s2 }
0x11e7   :  { %v1364_v25 = vpop.permute.xlu2 %1363  ;;  %v1549_v4 = vld [vmem:[#allocation4 + $0x20] sm:$0xff] }
0x11e8   :  { %1366 = vst.msk [vmem:[#allocation4 + $0x8] sm:$0xff] %vm93_vm0, %v1364_v25  ;;  %v2045_v42 = vpack.i.bf16 %v1550_v12, %v1549_v4 }
0x11ea   :  { %1023 = vrot.lane.b32.xlu0 %v2453_v63, %s2240_s2 }
0x11ef   :  { %v1546_v16 = vld [vmem:[#allocation4 + $0x8] sm:$0xff] }
0x124b   :  { %v1486_v28 = vpop.permute.xlu1 %1485 }
0x124c   :  { %v1524_v47 = vpop.permute.xlu0 %1523  ;;  %v1488_v0 = vmul.f32 %v1486_v28, %v1469_v51 }
0x124d   :  { %v1526_v3 = vmul.f32 %v1524_v47, %v1507_v7 }
0x124e   :  { %1528 = vrot.lane.b32.xlu1 %v1488_v0, %s2240_s2 }
0x124f   :  { %1533 = vrot.lane.b32.xlu0 %v1526_v3, %s2240_s2 }
0x1253   :  { %v1194_v5 = vpop.permute.xlu1 %1193 }
0x1254   :  { %v514_v6 = vpop.permute.xlu0 %513  ;;  %1196 = vst.msk [vmem:[#allocation4 + $0x10] sm:$0xff] %vm93_vm0, %v1194_v5 }
0x1255   :  { %516 = vst.msk [vmem:[#allocation4 + $0x30] sm:$0xff] %vm93_vm0, %v514_v6 }
0x1256   :  { %2046 = vrot.lane.b32.xlu1 %v2045_v42, %s2240_s2 }
0x125b   :  { %v1547_v1 = vld [vmem:[#allocation4 + $0x10] sm:$0xff] }
0x125c   :  { %v1024_v63 = vpop.permute.xlu0 %1023  ;;  %v1551_v21 = vld [vmem:[#allocation4 + $0x30] sm:$0xff] }
0x125d   :  { %1026 = vst.msk [vmem:[#allocation4 + $0x18] sm:$0xff] %vm93_vm0, %v1024_v63  ;;  %v2050_v22 = vpack.i.bf16 %v1552_v44, %v1551_v21 }
0x1264   :  { %v1548_v8 = vld [vmem:[#allocation4 + $0x18] sm:$0xff] }
0x1265   :  { %v2040_v31 = vpack.i.bf16 %v1548_v8, %v1547_v1 }
0x1267   :  { %2041 = vrot.lane.b32.xlu0 %v2040_v31, %s2240_s2 }
0x12c0   :  { %v1529_v9 = vpop.permute.xlu1 %1528 }
0x12c1   :  { %v1534_v13 = vpop.permute.xlu0 %1533  ;;  %1531 = vst.msk [vmem:[#allocation3 + $0x38] sm:$0xff] %vm93_vm0, %v1529_v9 }
0x12c2   :  { %1536 = vst.msk [vmem:[#allocation4] sm:$0xff] %vm93_vm0, %v1534_v13 }
0x12c8   :  { %v2047_v30 = vpop.permute.xlu1 %2046  ;;  %v1544_v40 = vld [vmem:[#allocation3 + $0x38] sm:$0xff] }
0x12c9   :  { %v2049_v14 = vunpack.i.h.bf16 %v2047_v30  ;;  %v2048_v38 = vunpack.i.l.bf16 %v2047_v30  ;;  %v1545_v15 = vld [vmem:[#allocation4] sm:$0xff] }
0x12ca   :  { %v2035_v18 = vpack.i.bf16 %v1546_v16, %v1545_v15 }
0x12cb   :  { %v1590_v19 = vsel %vm93_vm0, %v1542_v17, %v2049_v14  ;;  %v1589_v20 = vsel %vm93_vm0, %v1541_v32, %v2048_v38 }
0x12cc   :  { %v1598_v46 = vpack.c.bf16 %v1590_v19, %v1590_v19  ;;  %v1597_v10 = vpack.c.bf16 %v1589_v20, %v1589_v20  ;;  %2036 = vrot.lane.b32.xlu2 %v2035_v18, %s2240_s2 }
0x12ce   :  { %1607 = vst.msk [vmem:[#allocation8 + $0x14] sm:$0xf] %vm1601_vm8, %v1598_v46 }
0x12cf   :  { %1606 = vst.msk [vmem:[#allocation8 + $0x10] sm:$0xf] %vm1601_vm8, %v1597_v10 }
0x12d4   :  { %2051 = vrot.lane.b32.xlu2 %v2050_v22, %s2240_s2 }
0x12d9   :  { %v2042_v23 = vpop.permute.xlu0 %2041 }
0x12da   :  { %v2044_v24 = vunpack.i.h.bf16 %v2042_v23  ;;  %v2043_v39 = vunpack.i.l.bf16 %v2042_v23 }
0x12dc   :  { %v1588_v27 = vsel %vm93_vm0, %v1540_v53, %v2044_v24  ;;  %v1587_v29 = vsel %vm93_vm0, %v1539_v26, %v2043_v39 }
0x12dd   :  { %v1596_v33 = vpack.c.bf16 %v1588_v27, %v1588_v27  ;;  %v1595_v7 = vpack.c.bf16 %v1587_v29, %v1587_v29 }
0x12df   :  { %1605 = vst.msk [vmem:[#allocation8 + $0xc] sm:$0xf] %vm1601_vm8, %v1596_v33 }
0x12e0   :  { %1604 = vst.msk [vmem:[#allocation8 + $0x8] sm:$0xf] %vm1601_vm8, %v1595_v7 }
0x1326   :  { %v2037_v34 = vpop.permute.xlu2 %2036 }
0x1327   :  { %v2039_v35 = vunpack.i.h.bf16 %v2037_v34  ;;  %v2038_v2 = vunpack.i.l.bf16 %v2037_v34 }
0x1329   :  { %v1586_v11 = vsel %vm93_vm0, %v1538_v37, %v2039_v35  ;;  %v1585_v43 = vsel %vm93_vm0, %v1537_v36, %v2038_v2 }
0x132a   :  { %v1594_v45 = vpack.c.bf16 %v1586_v11, %v1586_v11  ;;  %v1593_v58 = vpack.c.bf16 %v1585_v43, %v1585_v43 }
0x132c   :  { %1603 = vst.msk [vmem:[#allocation8 + $0x4] sm:$0xf] %vm1601_vm8, %v1594_v45 }
0x132d   :  { %1602 = vst.msk [vmem:[#allocation8] sm:$0xf] %vm1601_vm8, %v1593_v58 }
0x132e   :  { %v2052_v48 = vpop.permute.xlu2 %2051 }
0x132f   :  { %v2054_v49 = vunpack.i.h.bf16 %v2052_v48  ;;  %v2053_v51 = vunpack.i.l.bf16 %v2052_v48 }
0x1331   :  { %v1591_v54 = vsel %vm93_vm0, %v1543_v52, %v2053_v51  ;;  %v1592_v55 = vsel %vm93_vm0, %v1544_v40, %v2054_v49 }
0x1332   :  { %v1599_v56 = vpack.c.bf16 %v1591_v54, %v1591_v54  ;;  %v1600_v57 = vpack.c.bf16 %v1592_v55, %v1592_v55 }
0x1334   :  { %1608 = vst.msk [vmem:[#allocation8 + $0x18] sm:$0xf] %vm1601_vm8, %v1599_v56 }
0x1335   :  { %1609 = vst.msk [vmem:[#allocation8 + $0x1c] sm:$0xf] %vm1601_vm8, %v1600_v57 }
0x1336   :  { %1622 = dma.vmem_to_hbm [thread:$0]  %s1615_s21, 512, %s1617_s24, [#allocation7], %s2239_s0, %s2239_s0, %s2242_s25  }
0x1337   :  { %2233 = dma.done.wait [#allocation7], 512  }
0x1338   :  { %2234 = vsyncadd [#allocation7], 4294966784 }
0x1339   :  { %1627 = vsyncpa [#allocation6], 1 }
0x133a   :  { %1628 = vsyncpa [#allocation7], 1 }

</bundles_post_ra>
